<compile_context>
chip_gen: v6e
topology: v6e:2x2x1
jax: 0.10.0
libtpu: 0.0.40
codegen_flags: <defaults>
</compile_context>

<pallas_src>
import functools

import jax
import jax.numpy as jnp
from jax.experimental import pallas as pl
from jax.experimental.pallas import tpu as pltpu


def _attention_pooling_kernel(x_ref, ctx_ref, bias_ref,
                              wqkv_ref, hsum_ref, hexp_ref, wo_ref,
                              o_ref, *, head_dim):
    """One grid step == one tile of Bt batch rows.

    x_ref:    (Bt, NC)        f32   residual input
    ctx_ref:  (Bt, S, Cctx)   bf16
    bias_ref: (Bt, S)         f32   additive attention bias (0 keep / -1e30 drop)
    wqkv_ref: (Cctx, 3*NC)    bf16  [Wq | Wk | Wv] fused
    hsum_ref: (NC, H)         bf16  channel -> head selector (0/1)
    hexp_ref: (H, NC)         bf16  head -> channel expansion selector (0/1)
    wo_ref:   (NC, NC)        bf16
    o_ref:    (Bt, NC)        f32
    """
    bt, nc = x_ref.shape
    s_len = ctx_ref.shape[1]
    h = nc // head_dim

    ctx = ctx_ref[...]                                     # (Bt, S, Cctx) bf16
    cctx = ctx.shape[-1]
    ctx_flat = ctx.reshape(bt * s_len, cctx)               # layout-preserving

    # ---- single fused projection: [q | k | v] = ctx @ [Wq | Wk | Wv]
    qkv = jnp.dot(ctx_flat, wqkv_ref[...],
                  preferred_element_type=jnp.float32)      # (Bt*S, 3NC) f32
    q_all = qkv[:, :nc].reshape(bt, s_len, nc)             # lane-aligned slices
    k3 = qkv[:, nc:2 * nc].reshape(bt, s_len, nc)
    v3 = qkv[:, 2 * nc:].reshape(bt, s_len, nc)

    # ---- pooled query: mean over the sequence (XLU sublane reduce); the
    # softmax scale d^-0.5 and the exact f32 1/S are folded into one multiply.
    # (mean-then-project == project-then-mean: the projection is linear.)
    q = jnp.sum(q_all, axis=1) * jnp.float32(head_dim ** -0.5 / s_len)  # (Bt, NC)

    # ---- scores: elementwise q*k, then per-head 64-lane block-sum via a tiny
    # bf16 selector matmul (f32 accumulation); scale already folded into q.
    qk = (q[:, None, :] * k3).astype(jnp.bfloat16)          # (Bt, S, NC)
    scores = jnp.dot(qk.reshape(bt * s_len, nc), hsum_ref[...],
                     preferred_element_type=jnp.float32)    # (Bt*S, H) f32
    scores = scores.reshape(bt, s_len, h) + bias_ref[...][:, :, None]

    # ---- stable softmax over the sequence axis (sublane reduces)
    m = jnp.max(scores, axis=1, keepdims=True)              # (Bt, 1, H)
    p = jnp.exp(scores - m)                                  # (Bt, S, H)
    l = jnp.sum(p, axis=1, keepdims=True)                    # (Bt, 1, H)
    probs = p * pl.reciprocal(l, approx=True)                # (Bt, S, H)

    # ---- expand per-head probs back to channels (H -> NC) via a tiny bf16
    # matmul, weight V on the VPU, reduce over the sequence on the XLU.
    probs_c = jnp.dot(probs.astype(jnp.bfloat16).reshape(bt * s_len, h),
                      hexp_ref[...],
                      preferred_element_type=jnp.float32)    # (Bt*S, NC)
    weighted = probs_c.reshape(bt, s_len, nc) * v3           # (Bt, S, NC) f32
    attn = jnp.sum(weighted, axis=1)                         # (Bt, NC) f32

    out = jnp.dot(attn.astype(jnp.bfloat16), wo_ref[...],
                  preferred_element_type=jnp.float32)        # (Bt, NC)

    o_ref[...] = x_ref[...] + out                            # residual add


def _tpu_generation_hints():
    """(mxu_row_target, min_parallel_grid_steps) per TPU generation."""
    try:
        kind = jax.devices()[0].device_kind.lower()
    except Exception:
        kind = ""
    if "v7" in kind:
        return 256, 2          # 256-wide MXU, 2 TensorCores per chip
    if "v6" in kind:
        return 256, 1          # 256-wide MXU, single TensorCore
    if "v5p" in kind or "v4" in kind or "v3" in kind:
        return 128, 2          # 128-wide MXU, megacore
    if "v5" in kind:
        return 128, 1          # v5e: 128x128 MXU, single TensorCore
    return 256, 1              # unknown/future: large tiles, no forced split


def _pick_batch_tile(batch, seq, row_target, min_steps):
    """Largest divisor of `batch` giving bt*seq >= row_target MXU rows while
    keeping >= min_steps grid steps (only enforced if batch allows it)."""
    best = 1
    for bt in range(1, batch + 1):
        if batch % bt:
            continue
        if batch >= min_steps and (batch // bt) < min_steps:
            continue
        best = bt
        if bt * seq >= row_target:
            break
    return best


def _vmem_limit_bytes(bt, seq, cctx, nc, h):
    """Realistic scoped-VMEM request (working set + headroom), not 64 MiB."""
    f32, bf16 = 4, 2
    weights = (cctx * 3 * nc + nc * nc + 2 * h * nc) * bf16
    step_io = bt * nc * f32 * 2 + bt * seq * cctx * bf16 + bt * seq * f32
    interm = bt * seq * nc * f32 * 6
    need = 2 * weights + 2 * step_io + interm    # <=2 buffers per operand
    return int(min(32 * 1024 * 1024, max(8 * 1024 * 1024, 4 * need)))


def attention_pooling(x, context, context_mask, wq, wk, wv, wo,
                      *, head_dim=64, batch_tile=None):
    B, NC = x.shape
    _, S, Cctx = context.shape
    assert NC % head_dim == 0
    H = NC // head_dim

    row_target, min_steps = _tpu_generation_hints()
    if batch_tile is None:
        batch_tile = _pick_batch_tile(B, S, row_target, min_steps)
    assert B % batch_tile == 0
    bt = batch_tile

    # bf16 weights / context (halves DMA, native MXU input); f32 accumulation.
    ctx_b = context.astype(jnp.bfloat16)
    wqkv_b = jnp.concatenate([wq, wk, wv], axis=1).astype(jnp.bfloat16)
    wo_b = wo.astype(jnp.bfloat16)
    x_f = x.astype(jnp.float32)

    # Additive attention bias precomputed once (no in-kernel compare+select).
    bias = jnp.where(context_mask != 0, 0.0, -1e30).astype(jnp.float32)

    # Head selector matrices precomputed once; constant index_maps below mean
    # they are DMA'd a single time and never re-materialized per step.
    head_of_ch = jnp.arange(NC) // head_dim
    hsum = (head_of_ch[:, None] == jnp.arange(H)[None, :]).astype(jnp.bfloat16)
    hexp = (jnp.arange(H)[:, None] == head_of_ch[None, :]).astype(jnp.bfloat16)

    kernel = functools.partial(_attention_pooling_kernel, head_dim=head_dim)

    # TODO(synk): at production sizes (Cctx ~ 4096) the fused Wqkv slab alone
    # outgrows v7x's 64 MiB VMEM — add a Cctx/NC tiling grid axis with a
    # pl.when accumulator and single-buffer the constant weight blocks
    # (pipeline_mode=pl.Buffered(1)); not needed at these shapes.
    return pl.pallas_call(
        kernel,
        out_shape=jax.ShapeDtypeStruct((B, NC), jnp.float32),
        grid_spec=pltpu.PrefetchScalarGridSpec(
            num_scalar_prefetch=0,
            grid=(B // bt,),
            in_specs=[
                pl.BlockSpec((bt, NC), lambda b: (b, 0)),            # x
                pl.BlockSpec((bt, S, Cctx), lambda b: (b, 0, 0)),    # context
                pl.BlockSpec((bt, S), lambda b: (b, 0)),             # bias
                pl.BlockSpec((Cctx, 3 * NC), lambda b: (0, 0)),      # Wqkv fused
                pl.BlockSpec((NC, H), lambda b: (0, 0)),             # head-sum sel
                pl.BlockSpec((H, NC), lambda b: (0, 0)),             # head-exp sel
                pl.BlockSpec((NC, NC), lambda b: (0, 0)),            # Wo
            ],
            out_specs=pl.BlockSpec((bt, NC), lambda b: (b, 0)),
        ),
        compiler_params=pltpu.CompilerParams(
            dimension_semantics=("parallel",),
            vmem_limit_bytes=_vmem_limit_bytes(bt, S, Cctx, NC, H)),
    )(x_f, ctx_b, bias, wqkv_b, hsum, hexp, wo_b)


def attention_pooling_ref(x, context, context_mask, wq, wk, wv, wo, *, head_dim=64):
    """Pure-JAX reference mirroring the PyTorch module (f32 math)."""
    B, S, _ = context.shape
    NC = x.shape[1]
    H = NC // head_dim
    scale = head_dim ** -0.5

    pooled = context.mean(axis=1, keepdims=True)                    # (B,1,Cctx)
    q = pooled @ wq                                                  # (B,1,NC)
    k = context @ wk                                                 # (B,S,NC)
    v = context @ wv

    qh = q.reshape(B, 1, H, head_dim).transpose(0, 2, 1, 3)
    kh = k.reshape(B, S, H, head_dim).transpose(0, 2, 1, 3)
    vh = v.reshape(B, S, H, head_dim).transpose(0, 2, 1, 3)

    scores = jnp.einsum('bhid,bhjd->bhij', qh, kh) * scale           # (B,H,1,S)
    neg = -jnp.finfo(scores.dtype).max
    scores = jnp.where(context_mask[:, None, None, :] != 0, scores, neg)
    probs = jax.nn.softmax(scores, axis=-1)

    out = jnp.einsum('bhij,bhjd->bhid', probs, vh)                   # (B,H,1,D)
    out = out.transpose(0, 2, 1, 3).reshape(B, 1, NC) @ wo           # (B,1,NC)
    return x + out[:, 0, :]


if __name__ == "__main__":
    # Small shapes consistent with the module:
    #   num_channels=128, context_dim=128, head_dim=64 -> 2 heads.
    # B=16, S=16 so a 256-row tile (v6e/v7x target) or 128-row tile (v5e) fits.
    B, S = 16, 16
    NC, CCTX, HEAD_DIM = 128, 128, 64

    key = jax.random.PRNGKey(0)
    kx, kc, kq, kk, kv, ko = jax.random.split(key, 6)

    x = jax.random.normal(kx, (B, NC), dtype=jnp.float32)
    context = jax.random.normal(kc, (B, S, CCTX), dtype=jnp.float32)

    # Per-row valid lengths in [1, S]; mask keeps the first `len` tokens.
    lens = (jnp.arange(B) % S) + 1                                   # (B,)
    context_mask = (jnp.arange(S)[None, :] < lens[:, None]).astype(jnp.float32)

    wq = 0.05 * jax.random.normal(kq, (CCTX, NC), dtype=jnp.float32)
    wk = 0.05 * jax.random.normal(kk, (CCTX, NC), dtype=jnp.float32)
    wv = 0.05 * jax.random.normal(kv, (CCTX, NC), dtype=jnp.float32)
    wo = 0.05 * jax.random.normal(ko, (NC, NC), dtype=jnp.float32)

    out = attention_pooling(x, context, context_mask, wq, wk, wv, wo,
                            head_dim=HEAD_DIM)
    out = jax.block_until_ready(out)

    # Reference on bf16-rounded inputs (the kernel casts them the same way),
    # computed in f32 — isolates kernel correctness from input rounding.
    def bf16_round(a):
        return a.astype(jnp.bfloat16).astype(jnp.float32)

    ref = attention_pooling_ref(x, bf16_round(context), context_mask,
                                bf16_round(wq), bf16_round(wk),
                                bf16_round(wv), bf16_round(wo),
                                head_dim=HEAD_DIM)

    assert out.shape == (B, NC)
    assert jnp.allclose(out, ref, atol=2e-2, rtol=2e-2), \
        float(jnp.max(jnp.abs(out - ref)))

    print("KERNEL_OK")
</pallas_src>

<mosaic_0001>
module attributes {stable_mosaic.version = 11 : i64} {
  func.func @_attention_pooling_kernel(%arg0: i32, %arg1: memref<16x128xf32, #tpu.memory_space<vmem>>, %arg2: memref<16x16x128xbf16, #tpu.memory_space<vmem>>, %arg3: memref<16x16xf32, #tpu.memory_space<vmem>>, %arg4: memref<128x384xbf16, #tpu.memory_space<vmem>>, %arg5: memref<128x2xbf16, #tpu.memory_space<vmem>>, %arg6: memref<2x128xbf16, #tpu.memory_space<vmem>>, %arg7: memref<128x128xbf16, #tpu.memory_space<vmem>>, %arg8: memref<16x128xf32, #tpu.memory_space<vmem>>) attributes {dimension_semantics = [#tpu.dimension_semantics<parallel>], iteration_bounds = array<i64: 1>, scalar_prefetch = 0 : i64, scratch_operands = 0 : i64, tpu.core_type = #tpu.core_type<tc>, window_params = [{transform_indices = @transform_0, window_bounds = array<i64: 16, 128>}, {transform_indices = @transform_1, window_bounds = array<i64: 16, 16, 128>}, {transform_indices = @transform_2, window_bounds = array<i64: 16, 16>}, {pipeline_mode = #tpu.pipeline_mode<synchronous>, transform_indices = @transform_3, window_bounds = array<i64: 128, 384>}, {pipeline_mode = #tpu.pipeline_mode<synchronous>, transform_indices = @transform_4, window_bounds = array<i64: 128, 2>}, {pipeline_mode = #tpu.pipeline_mode<synchronous>, transform_indices = @transform_5, window_bounds = array<i64: 2, 128>}, {pipeline_mode = #tpu.pipeline_mode<synchronous>, transform_indices = @transform_6, window_bounds = array<i64: 128, 128>}, {transform_indices = @transform_7, window_bounds = array<i64: 16, 128>}]} {
    %c0 = arith.constant 0 : index
    %c0_0 = arith.constant 0 : index
    %c0_1 = arith.constant 0 : index
    %0 = vector.load %arg2[%c0, %c0_0, %c0_1] : memref<16x16x128xbf16, #tpu.memory_space<vmem>>, vector<16x16x128xbf16>
    %1 = vector.shape_cast %0 : vector<16x16x128xbf16> to vector<256x128xbf16>
    %c0_2 = arith.constant 0 : index
    %c0_3 = arith.constant 0 : index
    %2 = vector.load %arg4[%c0_2, %c0_3] : memref<128x384xbf16, #tpu.memory_space<vmem>>, vector<128x384xbf16>
    %cst = arith.constant dense<0.000000e+00> : vector<256x384xf32>
    %3 = tpu.matmul %1, %2, %cst {dimension_numbers = #tpu.dot_dimension_numbers<[1], [0], [0], [1], [0, 0, 1, 1], [], []>} : vector<256x128xbf16>, vector<128x384xbf16>, vector<256x384xf32> -> vector<256x384xf32>
    %4 = vector.extract_strided_slice %3 {offsets = [0, 0], sizes = [256, 128], strides = [1, 1]} : vector<256x384xf32> to vector<256x128xf32>
    %5 = vector.shape_cast %4 : vector<256x128xf32> to vector<16x16x128xf32>
    %6 = vector.extract_strided_slice %3 {offsets = [0, 128], sizes = [256, 128], strides = [1, 1]} : vector<256x384xf32> to vector<256x128xf32>
    %7 = vector.shape_cast %6 : vector<256x128xf32> to vector<16x16x128xf32>
    %8 = vector.extract_strided_slice %3 {offsets = [0, 256], sizes = [256, 128], strides = [1, 1]} : vector<256x384xf32> to vector<256x128xf32>
    %9 = vector.shape_cast %8 : vector<256x128xf32> to vector<16x16x128xf32>
    %cst_4 = arith.constant dense<0.000000e+00> : vector<16x128xf32>
    %10 = vector.multi_reduction <add>, %5, %cst_4 [1] : vector<16x16x128xf32> to vector<16x128xf32>
    %cst_5 = arith.constant 7.812500e-03 : f32
    %11 = vector.broadcast %cst_5 : f32 to vector<16x128xf32>
    %12 = arith.mulf %10, %11 : vector<16x128xf32>
    %13 = vector.shape_cast %12 : vector<16x128xf32> to vector<16x1x128xf32>
    %14 = vector.broadcast %13 : vector<16x1x128xf32> to vector<16x16x128xf32>
    %15 = arith.mulf %14, %7 : vector<16x16x128xf32>
    %16 = arith.truncf %15 : vector<16x16x128xf32> to vector<16x16x128xbf16>
    %17 = vector.shape_cast %16 : vector<16x16x128xbf16> to vector<256x128xbf16>
    %c0_6 = arith.constant 0 : index
    %c0_7 = arith.constant 0 : index
    %18 = vector.load %arg5[%c0_6, %c0_7] : memref<128x2xbf16, #tpu.memory_space<vmem>>, vector<128x2xbf16>
    %cst_8 = arith.constant dense<0.000000e+00> : vector<256x2xf32>
    %19 = tpu.matmul %17, %18, %cst_8 {dimension_numbers = #tpu.dot_dimension_numbers<[1], [0], [0], [1], [0, 0, 1, 1], [], []>} : vector<256x128xbf16>, vector<128x2xbf16>, vector<256x2xf32> -> vector<256x2xf32>
    %20 = vector.shape_cast %19 : vector<256x2xf32> to vector<16x16x2xf32>
    %c0_9 = arith.constant 0 : index
    %c0_10 = arith.constant 0 : index
    %21 = vector.load %arg3[%c0_9, %c0_10] : memref<16x16xf32, #tpu.memory_space<vmem>>, vector<16x16xf32>
    %22 = vector.shape_cast %21 : vector<16x16xf32> to vector<16x16x1xf32>
    %23 = vector.broadcast %22 : vector<16x16x1xf32> to vector<16x16x2xf32>
    %24 = arith.addf %20, %23 : vector<16x16x2xf32>
    %cst_11 = arith.constant dense<0xFF800000> : vector<16x2xf32>
    %25 = vector.multi_reduction <maximumf>, %24, %cst_11 [1] : vector<16x16x2xf32> to vector<16x2xf32>
    %26 = vector.shape_cast %25 : vector<16x2xf32> to vector<16x1x2xf32>
    %27 = vector.broadcast %26 : vector<16x1x2xf32> to vector<16x16x2xf32>
    %28 = arith.subf %24, %27 : vector<16x16x2xf32>
    %29 = math.exp %28 : vector<16x16x2xf32>
    %cst_12 = arith.constant dense<0.000000e+00> : vector<16x2xf32>
    %30 = vector.multi_reduction <add>, %29, %cst_12 [1] : vector<16x16x2xf32> to vector<16x2xf32>
    %31 = vector.shape_cast %30 : vector<16x2xf32> to vector<16x1x2xf32>
    %32 = tpu.reciprocal %31 {approx = true} : vector<16x1x2xf32> -> vector<16x1x2xf32>
    %33 = vector.broadcast %32 : vector<16x1x2xf32> to vector<16x16x2xf32>
    %34 = arith.mulf %29, %33 : vector<16x16x2xf32>
    %35 = arith.truncf %34 : vector<16x16x2xf32> to vector<16x16x2xbf16>
    %36 = vector.shape_cast %35 : vector<16x16x2xbf16> to vector<256x2xbf16>
    %c0_13 = arith.constant 0 : index
    %c0_14 = arith.constant 0 : index
    %37 = vector.load %arg6[%c0_13, %c0_14] : memref<2x128xbf16, #tpu.memory_space<vmem>>, vector<2x128xbf16>
    %cst_15 = arith.constant dense<0.000000e+00> : vector<256x128xf32>
    %38 = tpu.matmul %36, %37, %cst_15 {dimension_numbers = #tpu.dot_dimension_numbers<[1], [0], [0], [1], [0, 0, 1, 1], [], []>} : vector<256x2xbf16>, vector<2x128xbf16>, vector<256x128xf32> -> vector<256x128xf32>
    %39 = vector.shape_cast %38 : vector<256x128xf32> to vector<16x16x128xf32>
    %40 = arith.mulf %39, %9 : vector<16x16x128xf32>
    %cst_16 = arith.constant dense<0.000000e+00> : vector<16x128xf32>
    %41 = vector.multi_reduction <add>, %40, %cst_16 [1] : vector<16x16x128xf32> to vector<16x128xf32>
    %42 = arith.truncf %41 : vector<16x128xf32> to vector<16x128xbf16>
    %c0_17 = arith.constant 0 : index
    %c0_18 = arith.constant 0 : index
    %43 = vector.load %arg7[%c0_17, %c0_18] : memref<128x128xbf16, #tpu.memory_space<vmem>>, vector<128x128xbf16>
    %cst_19 = arith.constant dense<0.000000e+00> : vector<16x128xf32>
    %44 = tpu.matmul %42, %43, %cst_19 {dimension_numbers = #tpu.dot_dimension_numbers<[1], [0], [0], [1], [0, 0, 1, 1], [], []>} : vector<16x128xbf16>, vector<128x128xbf16>, vector<16x128xf32> -> vector<16x128xf32>
    %c0_20 = arith.constant 0 : index
    %c0_21 = arith.constant 0 : index
    %45 = vector.load %arg1[%c0_20, %c0_21] : memref<16x128xf32, #tpu.memory_space<vmem>>, vector<16x128xf32>
    %46 = arith.addf %45, %44 : vector<16x128xf32>
    %c0_22 = arith.constant 0 : index
    %c0_23 = arith.constant 0 : index
    %47 = vector.load %arg8[%c0_22, %c0_23] : memref<16x128xf32, #tpu.memory_space<vmem>>, vector<16x128xf32>
    tpu.vector_store %arg8[%c0_22, %c0_23], %46 {strides = array<i32>} : memref<16x128xf32, #tpu.memory_space<vmem>>, vector<16x128xf32>,
    return
  }
  func.func @transform_0(%arg0: i32) -> (i32, i32) {
    %c0_i32 = arith.constant 0 : i32
    %c0_i32_0 = arith.constant 0 : i32
    return %arg0, %c0_i32 : i32, i32
  }
  func.func @transform_1(%arg0: i32) -> (i32, i32, i32) {
    %c0_i32 = arith.constant 0 : i32
    %c0_i32_0 = arith.constant 0 : i32
    %c0_i32_1 = arith.constant 0 : i32
    return %arg0, %c0_i32, %c0_i32_0 : i32, i32, i32
  }
  func.func @transform_2(%arg0: i32) -> (i32, i32) {
    %c0_i32 = arith.constant 0 : i32
    %c0_i32_0 = arith.constant 0 : i32
    return %arg0, %c0_i32 : i32, i32
  }
  func.func @transform_3(%arg0: i32) -> (i32, i32) {
    %c0_i32 = arith.constant 0 : i32
    %c0_i32_0 = arith.constant 0 : i32
    %c0_i32_1 = arith.constant 0 : i32
    return %c0_i32, %c0_i32_0 : i32, i32
  }
  func.func @transform_4(%arg0: i32) -> (i32, i32) {
    %c0_i32 = arith.constant 0 : i32
    %c0_i32_0 = arith.constant 0 : i32
    %c0_i32_1 = arith.constant 0 : i32
    return %c0_i32, %c0_i32_0 : i32, i32
  }
  func.func @transform_5(%arg0: i32) -> (i32, i32) {
    %c0_i32 = arith.constant 0 : i32
    %c0_i32_0 = arith.constant 0 : i32
    %c0_i32_1 = arith.constant 0 : i32
    return %c0_i32, %c0_i32_0 : i32, i32
  }
  func.func @transform_6(%arg0: i32) -> (i32, i32) {
    %c0_i32 = arith.constant 0 : i32
    %c0_i32_0 = arith.constant 0 : i32
    %c0_i32_1 = arith.constant 0 : i32
    return %c0_i32, %c0_i32_0 : i32, i32
  }
  func.func @transform_7(%arg0: i32) -> (i32, i32) {
    %c0_i32 = arith.constant 0 : i32
    %c0_i32_0 = arith.constant 0 : i32
    return %arg0, %c0_i32 : i32, i32
  }
}

</mosaic_0001>

<bundles_post_ra>
// kernel: tpu_custom_call.1
= control target key start
LH: loop header
LB: loop body
LE: loop exit
PB: predicated region body
PF: predicated region fallthrough
CT: control target
= control target key end

     0   :  { %12 = vsyncpa [#allocation3], 0  ;;  %s3544_s0 = inlined_call_operand.hbm [shape: f32[16,128], index: 0, kind: input, shape index: {}]   ;;  %s3545_s1 = inlined_call_operand.hbm [shape: bf16[16,16,128], index: 1, kind: input, shape index: {}]   ;;  %s3546_s2 = inlined_call_operand.hbm [shape: f32[16,16], index: 2, kind: input, shape index: {}]   ;;  %s3547_s3 = inlined_call_operand.hbm [shape: bf16[128,384], index: 3, kind: input, shape index: {}]   ;;  %s3548_s4 = inlined_call_operand.vmem [shape: bf16[128,2], index: 4, kind: input, shape index: {}]   ;;  %s3549_s5 = inlined_call_operand.vmem [shape: bf16[2,128], index: 5, kind: input, shape index: {}]   ;;  %s3550_s6 = inlined_call_operand.vmem [shape: bf16[128,128], index: 6, kind: input, shape index: {}]   ;;  %s3551_s7 = inlined_call_operand.hbm [shape: f32[16,128], index: 7, kind: output, shape index: {}]  }
   0x1   :  { %13 = vsyncpa [#allocation6], 0 }
   0x2   :  { %14 = vsyncpa [#allocation9], 0 }
   0x3   :  { %15 = vsyncpa [#allocation4], 0  ;;  %s2923_s24 = smov [#allocation5]  }
   0x4   :  { %s33_s25 = sshll.u32 %s2923_s24, 4  ;;  %s34_s25 = int_to_ptr.vmem [resolvable:$true] %s33_s25 }
   0x5   :  { %s2823_s26 = scalar_lea.vmem %s34_s25, 2048  ;;  %p2828_p1 = scmp.lt.s32.totalorder %s34_s25, %s34_s25 }
   0x6   :  { %p2824_p0 = scmp.ne.s32.totalorder %s34_s25, %s2823_s26  ;;  %p2829_p2 = scmp.lt.s32.totalorder %s2823_s26, %s2823_s26 }
   0x8   :  { %p2830_p3 = por %p2829_p2, %p2828_p1 }
   0xa   :  { %p2831_p4 = pnand %p2830_p3, %p2824_p0 }
   0xc   :  { %2834 = shalt.err (!%p2831_p4)
}
   0xd   :  { %s2924_s27 = smov 64   ;;  %s2925_s28 = smov 4  }
   0xe   :  { %39 = dma.hbm_to_vmem [thread:$0]  %s3545_s1, 2048, %s34_s25, [#allocation6], %s2924_s27, %s2924_s27, %s2925_s28  }
   0xf   :  { %s2926_s8 = smov [#allocation2]  }
  0x10   :  { %s21_s9 = sshll.u32 %s2926_s8, 4  ;;  %s22_s9 = int_to_ptr.vmem [resolvable:$true] %s21_s9 }
  0x11   :  { %s2843_s10 = scalar_lea.vmem %s22_s9, 256  ;;  %p2848_p6 = scmp.lt.s32.totalorder %s22_s9, %s22_s9 }
  0x12   :  { %p2844_p5 = scmp.ne.s32.totalorder %s22_s9, %s2843_s10  ;;  %p2849_p7 = scmp.lt.s32.totalorder %s2843_s10, %s2843_s10 }
  0x14   :  { %p2850_p8 = por %p2849_p7, %p2848_p6 }
  0x16   :  { %p2851_p9 = pnand %p2850_p8, %p2844_p5 }
  0x18   :  { %2854 = shalt.err (!%p2851_p9)
}
  0x19   :  { %s2927_s11 = smov 128   ;;  %s2928_s12 = smov 8  }
  0x1a   :  { %27 = dma.hbm_to_vmem [thread:$0]  %s3544_s0, 256, %s22_s9, [#allocation3], %s2927_s11, %s2927_s11, %s2928_s12  }
  0x1b   :  { %s2929_s1 = smov [#allocation7]   ;;  %s2930_s16 = smov [#allocation8]  }
  0x1c   :  { %s45_s15 = sshll.u32 %s2929_s1, 4  ;;  %s57_s17 = sshll.u32 %s2930_s16, 4  ;;  %s46_s15 = int_to_ptr.vmem [resolvable:$true] %s45_s15  ;;  %s58_s17 = int_to_ptr.vmem [resolvable:$true] %s57_s17 }
  0x1d   :  { %s2863_s18 = scalar_lea.vmem %s46_s15, 256  ;;  %p2868_p11 = scmp.lt.s32.totalorder %s46_s15, %s46_s15 }
  0x1e   :  { %p2864_p10 = scmp.ne.s32.totalorder %s46_s15, %s2863_s18  ;;  %p2869_p12 = scmp.lt.s32.totalorder %s2863_s18, %s2863_s18 }
  0x20   :  { %p2870_p13 = por %p2869_p12, %p2868_p11 }
  0x22   :  { %p2871_p0 = pnand %p2870_p13, %p2864_p10 }
  0x24   :  { %2874 = shalt.err (!%p2871_p0)
}
  0x25   :  { %51 = dma.hbm_to_vmem [thread:$0]  %s3546_s2, 256, %s46_s15, [#allocation6], %s2927_s11, %s2927_s11, %s2928_s12  }
  0x26   :  { %s2883_s0 = scalar_lea.vmem %s58_s17, 3072  ;;  %p2888_p2 = scmp.lt.s32.totalorder %s58_s17, %s58_s17 }
  0x27   :  { %p2884_p1 = scmp.ne.s32.totalorder %s58_s17, %s2883_s0  ;;  %p2889_p3 = scmp.lt.s32.totalorder %s2883_s0, %s2883_s0 }
  0x29   :  { %p2890_p4 = por %p2889_p3, %p2888_p2 }
  0x2b   :  { %p2891_p5 = pnand %p2890_p4, %p2884_p1 }
  0x2d   :  { %2894 = shalt.err (!%p2891_p5)
}
  0x2e   :  { %s2931_s21 = smov 192   ;;  %s2932_s22 = smov 12  }
  0x2f   :  { %63 = dma.hbm_to_vmem [thread:$0]  %s3547_s3, 3072, %s58_s17, [#allocation9], %s2931_s21, %s2931_s21, %s2932_s22  }
  0x30   :  { %2915 = dma.done.wait [#allocation3], 256  }
  0x31   :  { %2916 = vsyncadd [#allocation3], 4294967040 }
  0x32   :  { %2917 = dma.done.wait [#allocation6], 2304  }
  0x33   :  { %2918 = vsyncadd [#allocation6], 4294964992 }
  0x34   :  { %2919 = dma.done.wait [#allocation9], 3072  }
  0x35   :  { %2920 = vsyncadd [#allocation9], 4294964224  ;;  %v2933_v0 = vmov 0   ;;  %v2655_v1 = vld [vmem:[#allocation8 + $0xac] ss:$12 sps:$4 sm:$0xff]   ;;  %v2679_v9 = vld [vmem:[#allocation5] sm:$0xff]   ;;  %v1128_v49 = vlaneseq }
  0x36   :  { %403 = vmatprep.mubr.bf16.mxu0 %v2933_v0  ;;  %v2657_v2 = vld [vmem:[#allocation8 + $0xa8] ss:$12 sps:$4 sm:$0xff]   ;;  %371 = vmatprep.subr.bf16.mxu0 %v2655_v1  ;;  %v2660_v4 = vld [vmem:[#allocation8 + $0x90] ss:$12 sps:$4 sm:$0xff]   ;;  %v2663_v6 = vld [vmem:[#allocation8 + $0x78] ss:$12 sps:$4 sm:$0xff]  }
  0x37   :  { %v2658_v3 = vld [vmem:[#allocation8 + $0x94] ss:$12 sps:$4 sm:$0xff]   ;;  %372 = vmatpush1.bf16.msra.mxu0 %v2657_v2  ;;  %v2661_v5 = vld [vmem:[#allocation8 + $0x7c] ss:$12 sps:$4 sm:$0xff]   ;;  %v2664_v7 = vld [vmem:[#allocation8 + $0x64] ss:$12 sps:$4 sm:$0xff]   ;;  %2506 = vmatprep.mubr.bf16.mxu1 %v2679_v9 }
  0x38   :  { %373 = vmatprep.subr.bf16.mxu0 %v2658_v3  ;;  %v2666_v8 = vld [vmem:[#allocation8 + $0x60] ss:$12 sps:$4 sm:$0xff]   ;;  %v2669_v11 = vld [vmem:[#allocation8 + $0x48] ss:$12 sps:$4 sm:$0xff]   ;;  %v2672_v13 = vld [vmem:[#allocation8 + $0x30] ss:$12 sps:$4 sm:$0xff]  }
  0x39   :  { %v2667_v10 = vld [vmem:[#allocation8 + $0x4c] ss:$12 sps:$4 sm:$0xff]   ;;  %v2670_v12 = vld [vmem:[#allocation8 + $0x34] ss:$12 sps:$4 sm:$0xff]   ;;  %v2673_v14 = vld [vmem:[#allocation8 + $0x1c] ss:$12 sps:$4 sm:$0xff]  }
  0x3a   :  { %v2675_v15 = vld [vmem:[#allocation8 + $0x18] ss:$12 sps:$4 sm:$0xff]   ;;  %v2678_v17 = vld [vmem:[#allocation8] ss:$12 sps:$4 sm:$0xff]   ;;  %v2695_v18 = vld [vmem:[#allocation8 + $0xb0] ss:$12 sps:$4 sm:$0xff]  }
  0x3b   :  { %374 = vmatpush1.bf16.msra.mxu0 %v2660_v4  ;;  %v2676_v16 = vld [vmem:[#allocation8 + $0x4] ss:$12 sps:$4 sm:$0xff]   ;;  %2490 = vmatprep.subr.bf16.mxu1 %v2695_v18  ;;  %v2697_v20 = vld [vmem:[#allocation8 + $0x80] ss:$12 sps:$4 sm:$0xff]   ;;  %v2698_v21 = vld [vmem:[#allocation8 + $0x68] ss:$12 sps:$4 sm:$0xff]  }
  0x3c   :  { %375 = vmatprep.subr.bf16.mxu0 %v2661_v5  ;;  %v2696_v19 = vld [vmem:[#allocation8 + $0x98] ss:$12 sps:$4 sm:$0xff]   ;;  %2491 = vmatpush3.bf16.msra.mxu1 %v2695_v18  ;;  %v2699_v23 = vld [vmem:[#allocation8 + $0x50] ss:$12 sps:$4 sm:$0xff]   ;;  %v2701_v26 = vld [vmem:[#allocation8 + $0x20] ss:$12 sps:$4 sm:$0xff]  }
  0x3d   :  { %2492 = vmatprep.subr.bf16.mxu1 %v2696_v19  ;;  %v2680_v22 = vld [vmem:[#allocation5 + $0x8] sm:$0xff]   ;;  %v2681_v25 = vld [vmem:[#allocation5 + $0x10] sm:$0xff]   ;;  %v2702_v27 = vld [vmem:[#allocation8 + $0x8] ss:$12 sps:$4 sm:$0xff]   ;;  %v3035_v50 = vshrl.u32 %v1128_v49, 7  ;;  %vm1834_vm0 = vcmask 1040384  }
  0x3e   :  { %v2700_v24 = vld [vmem:[#allocation8 + $0x38] ss:$12 sps:$4 sm:$0xff]   ;;  %v2682_v28 = vld [vmem:[#allocation5 + $0x18] sm:$0xff]   ;;  %v2683_v29 = vld [vmem:[#allocation5 + $0x20] sm:$0xff]   ;;  %vm1336_vm1 = vcmask 15360   ;;  %vm2935_vm2 = vmmov 0  }
  0x3f   :  { %376 = vmatpush1.bf16.msra.mxu0 %v2663_v6  ;;  %v2684_v30 = vld [vmem:[#allocation5 + $0x28] sm:$0xff]   ;;  %v2685_v31 = vld [vmem:[#allocation5 + $0x30] sm:$0xff]   ;;  %v2686_v32 = vld [vmem:[#allocation5 + $0x38] sm:$0xff]   ;;  %v1141_v51 = vsub.s32 1, %v3035_v50  ;;  %v1130_v54 = vsub.s32 0, %v3035_v50  ;;  %v1152_v56 = vsub.s32 2, %v3035_v50 }
  0x40   :  { %377 = vmatprep.subr.bf16.mxu0 %v2664_v7  ;;  %2493 = vmatpush3.bf16.msra.mxu1 %v2696_v19  ;;  %v2687_v33 = vld [vmem:[#allocation5 + $0x40] sm:$0xff]   ;;  %v2688_v34 = vld [vmem:[#allocation5 + $0x48] sm:$0xff]   ;;  %v2689_v35 = vld [vmem:[#allocation5 + $0x50] sm:$0xff]   ;;  %v1163_v58 = vsub.s32 3, %v3035_v50  ;;  %v1174_v2 = vsub.s32 4, %v3035_v50  ;;  %v1196_v19 = vsub.s32 6, %v3035_v50 }
  0x41   :  { %2494 = vmatprep.subr.bf16.mxu1 %v2697_v20  ;;  %v2703_v36 = vld [vmem:[%s3548_s4 + $0x38] sm:$0xff]   ;;  %v2690_v37 = vld [vmem:[#allocation5 + $0x58] sm:$0xff]   ;;  %v2691_v38 = vld [vmem:[#allocation5 + $0x60] sm:$0xff]   ;;  %vm2207_vm3 = vcmask 1041409   ;;  %vm2209_vm4 = vcmask 1042434   ;;  %vm2211_vm5 = vcmask 1043459  }
  0x42   :  { %v2704_v39 = vld [vmem:[%s3548_s4 + $0x30] sm:$0xff]   ;;  %v2705_v40 = vld [vmem:[%s3548_s4 + $0x28] sm:$0xff]   ;;  %v2692_v41 = vld [vmem:[#allocation5 + $0x68] sm:$0xff]   ;;  %vm2213_vm6 = vcmask 1044484   ;;  %vm2215_vm7 = vcmask 1045509   ;;  %vm2217_vm8 = vcmask 1046534  }
  0x43   :  { %378 = vmatpush1.bf16.msra.mxu0 %v2666_v8  ;;  %v2693_v42 = vld [vmem:[#allocation5 + $0x70] sm:$0xff]   ;;  %v2707_v44 = vld [vmem:[%s3548_s4 + $0x18] sm:$0xff]   ;;  %v2694_v45 = vld [vmem:[#allocation5 + $0x78] sm:$0xff]   ;;  %v1185_v8 = vsub.s32 5, %v3035_v50  ;;  %vm2219_vm9 = vcmask 1047559  }
  0x44   :  { %379 = vmatprep.subr.bf16.mxu0 %v2667_v10  ;;  %2495 = vmatpush3.bf16.msra.mxu1 %v2697_v20  ;;  %v2706_v43 = vld [vmem:[%s3548_s4 + $0x20] sm:$0xff]   ;;  %v2708_v46 = vld [vmem:[%s3548_s4 + $0x10] sm:$0xff]   ;;  %v2709_v47 = vld [vmem:[%s3548_s4 + $0x8] sm:$0xff]   ;;  %v1207_v20 = vsub.s32 7, %v3035_v50 }
  0x45   :  { %2496 = vmatprep.subr.bf16.mxu1 %v2698_v21  ;;  %v2710_v48 = vld [vmem:[%s3548_s4] sm:$0xff]   ;;  %v1126_v52 = vld [vmem:[#allocation7] sm:$0xff] }
  0x46   :  { %v1142_v53 = vrot.slane %v1126_v52, %v1141_v51  ;;  %v1131_v55 = vrot.slane %v1126_v52, %v1130_v54  ;;  %v1153_v57 = vrot.slane %v1126_v52, %v1152_v56  ;;  %v1164_v59 = vrot.slane %v1126_v52, %v1163_v58 }
  0x47   :  { %380 = vmatpush1.bf16.msra.mxu0 %v2669_v11  ;;  %v1175_v5 = vrot.slane %v1126_v52, %v1174_v2 }
  0x48   :  { %381 = vmatprep.subr.bf16.mxu0 %v2670_v12  ;;  %2497 = vmatpush3.bf16.msra.mxu1 %v2698_v21  ;;  %v1186_v12 = vrot.slane %v1126_v52, %v1185_v8 }
  0x49   :  { %2498 = vmatprep.subr.bf16.mxu1 %v2699_v23  ;;  %1144 = vbcast.lane.b32.xlu1 %v1142_v53, 256 }
  0x4a   :  { %1133 = vbcast.lane.b32.xlu0 %v1131_v55, 256 }
  0x4b   :  { %382 = vmatpush1.bf16.msra.mxu0 %v2672_v13 }
  0x4c   :  { %383 = vmatprep.subr.bf16.mxu0 %v2673_v14  ;;  %2499 = vmatpush3.bf16.msra.mxu1 %v2699_v23 }
  0x4d   :  { %2500 = vmatprep.subr.bf16.mxu1 %v2700_v24  ;;  %1148 = vbcast.lane.b32.xlu1 %v1142_v53, 264 }
  0x4e   :  { %1137 = vbcast.lane.b32.xlu0 %v1131_v55, 264 }
  0x4f   :  { %384 = vmatpush1.bf16.msra.mxu0 %v2675_v15 }
  0x50   :  { %385 = vmatprep.subr.bf16.mxu0 %v2676_v16  ;;  %2501 = vmatpush3.bf16.msra.mxu1 %v2700_v24  ;;  %v1197_v24 = vrot.slane %v1126_v52, %v1196_v19 }
  0x51   :  { %2502 = vmatprep.subr.bf16.mxu1 %v2701_v26  ;;  %1159 = vbcast.lane.b32.xlu1 %v1153_v57, 264 }
  0x52   :  { %1155 = vbcast.lane.b32.xlu0 %v1153_v57, 256 }
  0x53   :  { %386 = vmatpush1.bf16.msra.mxu0 %v2678_v17 }
  0x54   :  { %2503 = vmatpush3.bf16.msra.mxu1 %v2701_v26  ;;  %v1208_v26 = vrot.slane %v1126_v52, %v1207_v20 }
  0x55   :  { %2504 = vmatprep.subr.bf16.mxu1 %v2702_v27  ;;  %1170 = vbcast.lane.b32.xlu1 %v1164_v59, 264 }
  0x56   :  { %404 = vmatmul.mubr.bf16.vlgmr.msra.gmra.mxu0 %v2679_v9  ;;  %1166 = vbcast.lane.b32.xlu0 %v1164_v59, 256 }
  0x57   :  { %413 = vmatprep.mubr.bf16.mxu0 %v2933_v0 }
  0x58   :  { %2505 = vmatpush3.bf16.msra.mxu1 %v2702_v27 }
  0x59   :  { %2538 = vmatprep.subr.bf16.mxu1 %v2703_v36  ;;  %1181 = vbcast.lane.b32.xlu1 %v1175_v5, 264 }
  0x5a   :  { %1177 = vbcast.lane.b32.xlu0 %v1175_v5, 256 }
  0x5b   :  { %2507 = vmatmul.mubr.bf16.vlgmr.msra.gmra.mxu1 %v2680_v22 }
  0x5c   :  { %2510 = vmatprep.mubr.bf16.mxu1 %v2681_v25  ;;  %2539 = vmatpush3.bf16.msra.mxu1 %v2703_v36 }
  0x5d   :  { %2540 = vmatprep.subr.bf16.mxu1 %v2704_v39  ;;  %1192 = vbcast.lane.b32.xlu1 %v1186_v12, 264 }
  0x5e   :  { %414 = vmatmul.mubr.bf16.gmra.mxu0 %v2680_v22  ;;  %1188 = vbcast.lane.b32.xlu0 %v1186_v12, 256 }
  0x5f   :  { %423 = vmatprep.mubr.bf16.mxu0 %v2933_v0 }
  0x60   :  { %2541 = vmatpush3.bf16.msra.mxu1 %v2704_v39 }
  0x61   :  { %2542 = vmatprep.subr.bf16.mxu1 %v2705_v40  ;;  %1203 = vbcast.lane.b32.xlu1 %v1197_v24, 264 }
  0x62   :  { %1199 = vbcast.lane.b32.xlu0 %v1197_v24, 256 }
  0x63   :  { %2511 = vmatmul.mubr.bf16.gmra.mxu1 %v2682_v28 }
  0x64   :  { %2514 = vmatprep.mubr.bf16.mxu1 %v2683_v29  ;;  %2543 = vmatpush3.bf16.msra.mxu1 %v2705_v40 }
  0x65   :  { %2544 = vmatprep.subr.bf16.mxu1 %v2706_v43  ;;  %1214 = vbcast.lane.b32.xlu1 %v1208_v26, 264 }
  0x66   :  { %424 = vmatmul.mubr.bf16.gmra.mxu0 %v2681_v25  ;;  %1210 = vbcast.lane.b32.xlu0 %v1208_v26, 256 }
  0x67   :  { %433 = vmatprep.mubr.bf16.mxu0 %v2933_v0 }
  0x68   :  { %2545 = vmatpush3.bf16.msra.mxu1 %v2706_v43 }
  0x69   :  { %2546 = vmatprep.subr.bf16.mxu1 %v2707_v44 }
  0x6b   :  { %2515 = vmatmul.mubr.bf16.gmra.mxu1 %v2684_v30 }
  0x6c   :  { %2518 = vmatprep.mubr.bf16.mxu1 %v2685_v31  ;;  %2547 = vmatpush3.bf16.msra.mxu1 %v2707_v44 }
  0x6d   :  { %2548 = vmatprep.subr.bf16.mxu1 %v2708_v46 }
  0x6e   :  { %434 = vmatmul.mubr.bf16.gmra.mxu0 %v2682_v28 }
  0x6f   :  { %443 = vmatprep.mubr.bf16.mxu0 %v2933_v0 }
  0x70   :  { %2549 = vmatpush3.bf16.msra.mxu1 %v2708_v46 }
  0x71   :  { %2550 = vmatprep.subr.bf16.mxu1 %v2709_v47 }
  0x73   :  { %2519 = vmatmul.mubr.bf16.gmra.mxu1 %v2686_v32 }
  0x74   :  { %2522 = vmatprep.mubr.bf16.mxu1 %v2687_v33  ;;  %2551 = vmatpush3.bf16.msra.mxu1 %v2709_v47 }
  0x75   :  { %2552 = vmatprep.subr.bf16.mxu1 %v2710_v48 }
  0x76   :  { %444 = vmatmul.mubr.bf16.gmra.mxu0 %v2683_v29 }
  0x77   :  { %453 = vmatprep.mubr.bf16.mxu0 %v2933_v0 }
  0x78   :  { %2553 = vmatpush3.bf16.msra.mxu1 %v2710_v48 }
  0x7b   :  { %2523 = vmatmul.mubr.bf16.gmra.mxu1 %v2688_v34 }
  0x7c   :  { %2526 = vmatprep.mubr.bf16.mxu1 %v2689_v35 }
  0x7e   :  { %454 = vmatmul.mubr.bf16.gmra.mxu0 %v2684_v30 }
  0x7f   :  { %463 = vmatprep.mubr.bf16.mxu0 %v2933_v0 }
  0x83   :  { %2527 = vmatmul.mubr.bf16.gmra.mxu1 %v2690_v37 }
  0x84   :  { %2530 = vmatprep.mubr.bf16.mxu1 %v2691_v38 }
  0x86   :  { %464 = vmatmul.mubr.bf16.gmra.mxu0 %v2685_v31 }
  0x87   :  { %473 = vmatprep.mubr.bf16.mxu0 %v2933_v0 }
  0x8b   :  { %2531 = vmatmul.mubr.bf16.gmra.mxu1 %v2692_v41 }
  0x8c   :  { %2534 = vmatprep.mubr.bf16.mxu1 %v2693_v42 }
  0x8e   :  { %474 = vmatmul.mubr.bf16.gmra.mxu0 %v2686_v32  ;;  %v3061_v32 = vld [vmem:[#allocation7 + $0x8] sm:$0xff] }
  0x8f   :  { %483 = vmatprep.mubr.bf16.mxu0 %v2933_v0  ;;  %v1219_v39 = vrot.slane %v3061_v32, %v1130_v54  ;;  %v1230_v44 = vrot.slane %v3061_v32, %v1141_v51 }
  0x91   :  { %1221 = vbcast.lane.b32.xlu0 %v1219_v39, 256  ;;  %1225 = vbcast.lane.b32.xlu1 %v1219_v39, 264 }
  0x93   :  { %2535 = vmatmul.mubr.bf16.gmra.mxu1 %v2694_v45 }
  0x95   :  { %1232 = vbcast.lane.b32.xlu0 %v1230_v44, 256  ;;  %1236 = vbcast.lane.b32.xlu1 %v1230_v44, 264 }
  0x96   :  { %484 = vmatmul.mubr.bf16.gmra.mxu0 %v2687_v33 }
  0x97   :  { %493 = vmatprep.mubr.bf16.mxu0 %v2933_v0 }
  0x9e   :  { %494 = vmatmul.mubr.bf16.gmra.mxu0 %v2688_v34 }
  0x9f   :  { %503 = vmatprep.mubr.bf16.mxu0 %v2933_v0 }
  0xa6   :  { %504 = vmatmul.mubr.bf16.gmra.mxu0 %v2689_v35 }
  0xa7   :  { %513 = vmatprep.mubr.bf16.mxu0 %v2933_v0 }
  0xae   :  { %514 = vmatmul.mubr.bf16.gmra.mxu0 %v2690_v37 }
  0xaf   :  { %523 = vmatprep.mubr.bf16.mxu0 %v2933_v0 }
  0xb6   :  { %524 = vmatmul.mubr.bf16.gmra.mxu0 %v2691_v38 }
  0xb7   :  { %533 = vmatprep.mubr.bf16.mxu0 %v2933_v0 }
  0xbe   :  { %534 = vmatmul.mubr.bf16.gmra.mxu0 %v2692_v41 }
  0xbf   :  { %543 = vmatprep.mubr.bf16.mxu0 %v2933_v0 }
  0xc6   :  { %544 = vmatmul.mubr.bf16.gmra.mxu0 %v2693_v42 }
  0xc7   :  { %553 = vmatprep.mubr.bf16.mxu0 %v2933_v0 }
  0xce   :  { %554 = vmatmul.mubr.bf16.gmra.mxu0 %v2694_v45 }
 0x116   :  { %v405_v60 = vpop.f32.mrf.mxu0 }
 0x118   :  { %v407_v61 = vpop.f32.mrf.mxu0 }
 0x11a   :  { %v409_v62 = vpop.f32.mrf.mxu0 }
 0x11b   :  { %v725_v63 = vadd.f32 %v409_v62, %v405_v60  ;;  %v1241_v60 = vrot.slane %v3061_v32, %v1152_v56 }
 0x11c   :  { %v411_v0 = vpop.f32.mrf.mxu0 }
 0x11d   :  { %v726_v1 = vrot.slane %v725_v63, 4  ;;  %1243 = vbcast.lane.b32.xlu0 %v1241_v60, 256  ;;  %1247 = vbcast.lane.b32.xlu1 %v1241_v60, 264 }
 0x11e   :  { %v415_v3 = vpop.f32.mrf.mxu0 }
 0x11f   :  { %v727_v4 = vadd.f32 %v726_v1, %v725_v63 }
 0x120   :  { %v417_v6 = vpop.f32.mrf.mxu0 }
 0x121   :  { %v728_v7 = vrot.slane %v727_v4, 2 }
 0x122   :  { %v419_v9 = vpop.f32.mrf.mxu0 }
 0x123   :  { %v729_v10 = vadd.f32 %v728_v7, %v727_v4  ;;  %v732_v11 = vadd.f32 %v419_v9, %v415_v3 }
 0x124   :  { %v421_v13 = vpop.f32.mrf.mxu0 }
 0x125   :  { %v730_v14 = vrot.slane %v729_v10, 1  ;;  %v733_v15 = vrot.slane %v732_v11, 4 }
 0x126   :  { %v425_v16 = vpop.f32.mrf.mxu0 }
 0x127   :  { %v731_v17 = vadd.f32 %v730_v14, %v729_v10  ;;  %v734_v18 = vadd.f32 %v733_v15, %v732_v11 }
 0x128   :  { %v427_v21 = vpop.f32.mrf.mxu0 }
 0x129   :  { %v837_v22 = vmul.f32 0.0078125, %v731_v17  ;;  %v735_v23 = vrot.slane %v734_v18, 2  ;;  %v1274_v17 = vrot.slane %v3061_v32, %v1185_v8 }
 0x12a   :  { %v429_v25 = vpop.f32.mrf.mxu0 }
 0x12b   :  { %v853_v27 = vmul.f32 %v837_v22, %v407_v61  ;;  %v854_v28 = vmul.f32 %v837_v22, %v411_v0  ;;  %v736_v29 = vadd.f32 %v735_v23, %v734_v18  ;;  %v739_v30 = vadd.f32 %v429_v25, %v425_v16 }
 0x12c   :  { %v431_v31 = vpop.f32.mrf.mxu0  ;;  %v1252_v0 = vrot.slane %v3061_v32, %v1163_v58 }
 0x12d   :  { %v885_v33 = vpack.c.bf16 %v854_v28, %v853_v27  ;;  %v737_v34 = vrot.slane %v736_v29, 1  ;;  %v740_v35 = vrot.slane %v739_v30, 4 }
 0x12e   :  { %v435_v36 = vpop.f32.mrf.mxu0  ;;  %1254 = vbcast.lane.b32.xlu0 %v1252_v0, 256  ;;  %1258 = vbcast.lane.b32.xlu1 %v1252_v0, 264 }
 0x12f   :  { %v738_v37 = vadd.f32 %v737_v34, %v736_v29  ;;  %v741_v38 = vadd.f32 %v740_v35, %v739_v30  ;;  %2554 = vmatprep.mubr.bf16.mxu1 %v885_v33  ;;  %v1285_v30 = vrot.slane %v3061_v32, %v1196_v19  ;;  %v1296_v35 = vrot.slane %v3061_v32, %v1207_v20 }
 0x130   :  { %v437_v40 = vpop.f32.mrf.mxu0 }
 0x131   :  { %v838_v41 = vmul.f32 0.0078125, %v738_v37  ;;  %v742_v42 = vrot.slane %v741_v38, 2 }
 0x132   :  { %v439_v43 = vpop.f32.mrf.mxu0 }
 0x133   :  { %v855_v45 = vmul.f32 %v838_v41, %v417_v6  ;;  %v856_v46 = vmul.f32 %v838_v41, %v421_v13  ;;  %v743_v47 = vadd.f32 %v742_v42, %v741_v38  ;;  %v746_v48 = vadd.f32 %v439_v43, %v435_v36 }
 0x134   :  { %v441_v49 = vpop.f32.mrf.mxu0  ;;  %v1263_v13 = vrot.slane %v3061_v32, %v1174_v2 }
 0x135   :  { %v886_v52 = vpack.c.bf16 %v856_v46, %v855_v45  ;;  %v744_v53 = vrot.slane %v743_v47, 1  ;;  %v747_v55 = vrot.slane %v746_v48, 4 }
 0x136   :  { %v445_v54 = vpop.f32.mrf.mxu0  ;;  %1265 = vbcast.lane.b32.xlu0 %v1263_v13, 256  ;;  %1269 = vbcast.lane.b32.xlu1 %v1263_v13, 264 }
 0x137   :  { %v745_v57 = vadd.f32 %v744_v53, %v743_v47  ;;  %v748_v59 = vadd.f32 %v747_v55, %v746_v48  ;;  %2555 = vmatmul.mubr.bf16.vlgmr.msra.gmra.mxu1 %v886_v52 }
 0x138   :  { %v447_v51 = vpop.f32.mrf.mxu0 }
 0x139   :  { %v839_v61 = vmul.f32 0.0078125, %v745_v57  ;;  %v749_v62 = vrot.slane %v748_v59, 2 }
 0x13a   :  { %v449_v63 = vpop.f32.mrf.mxu0  ;;  %1276 = vbcast.lane.b32.xlu0 %v1274_v17, 256  ;;  %1280 = vbcast.lane.b32.xlu1 %v1274_v17, 264 }
 0x13b   :  { %v857_v1 = vmul.f32 %v839_v61, %v427_v21  ;;  %v858_v3 = vmul.f32 %v839_v61, %v431_v31  ;;  %v750_v4 = vadd.f32 %v749_v62, %v748_v59  ;;  %v753_v5 = vadd.f32 %v449_v63, %v445_v54 }
 0x13c   :  { %v451_v6 = vpop.f32.mrf.mxu0 }
 0x13d   :  { %v887_v7 = vpack.c.bf16 %v858_v3, %v857_v1  ;;  %v751_v9 = vrot.slane %v750_v4, 1  ;;  %v754_v10 = vrot.slane %v753_v5, 4 }
 0x13e   :  { %v455_v56 = vpop.f32.mrf.mxu0  ;;  %1287 = vbcast.lane.b32.xlu0 %v1285_v30, 256  ;;  %1291 = vbcast.lane.b32.xlu1 %v1285_v30, 264 }
 0x13f   :  { %v752_v11 = vadd.f32 %v751_v9, %v750_v4  ;;  %v755_v12 = vadd.f32 %v754_v10, %v753_v5  ;;  %2558 = vmatprep.mubr.bf16.mxu1 %v887_v7 }
 0x140   :  { %v457_v58 = vpop.f32.mrf.mxu0 }
 0x141   :  { %v840_v14 = vmul.f32 0.0078125, %v752_v11  ;;  %v756_v15 = vrot.slane %v755_v12, 2 }
 0x142   :  { %v459_v16 = vpop.f32.mrf.mxu0  ;;  %1298 = vbcast.lane.b32.xlu0 %v1296_v35, 256  ;;  %1302 = vbcast.lane.b32.xlu1 %v1296_v35, 264 }
 0x143   :  { %v859_v18 = vmul.f32 %v840_v14, %v437_v40  ;;  %v860_v21 = vmul.f32 %v840_v14, %v441_v49  ;;  %v757_v22 = vadd.f32 %v756_v15, %v755_v12  ;;  %v760_v23 = vadd.f32 %v459_v16, %v455_v56 }
 0x144   :  { %v461_v24 = vpop.f32.mrf.mxu0 }
 0x145   :  { %v888_v25 = vpack.c.bf16 %v860_v21, %v859_v18  ;;  %v758_v26 = vrot.slane %v757_v22, 1  ;;  %v761_v27 = vrot.slane %v760_v23, 4 }
 0x146   :  { %v465_v2 = vpop.f32.mrf.mxu0 }
 0x147   :  { %v759_v28 = vadd.f32 %v758_v26, %v757_v22  ;;  %v762_v29 = vadd.f32 %v761_v27, %v760_v23  ;;  %2559 = vmatmul.mubr.bf16.gmra.mxu1 %v888_v25 }
 0x148   :  { %v467_v8 = vpop.f32.mrf.mxu0 }
 0x149   :  { %v841_v31 = vmul.f32 0.0078125, %v759_v28  ;;  %v763_v33 = vrot.slane %v762_v29, 2 }
 0x14a   :  { %v469_v34 = vpop.f32.mrf.mxu0 }
 0x14b   :  { %v861_v36 = vmul.f32 %v841_v31, %v447_v51  ;;  %v862_v37 = vmul.f32 %v841_v31, %v451_v6  ;;  %v764_v38 = vadd.f32 %v763_v33, %v762_v29  ;;  %v767_v39 = vadd.f32 %v469_v34, %v465_v2 }
 0x14c   :  { %v471_v40 = vpop.f32.mrf.mxu0 }
 0x14d   :  { %v889_v41 = vpack.c.bf16 %v862_v37, %v861_v36  ;;  %v765_v42 = vrot.slane %v764_v38, 1  ;;  %v768_v43 = vrot.slane %v767_v39, 4 }
 0x14e   :  { %v475_v19 = vpop.f32.mrf.mxu0 }
 0x14f   :  { %v766_v44 = vadd.f32 %v765_v42, %v764_v38  ;;  %v769_v45 = vadd.f32 %v768_v43, %v767_v39  ;;  %2562 = vmatprep.mubr.bf16.mxu1 %v889_v41 }
 0x150   :  { %v477_v46 = vpop.f32.mrf.mxu0 }
 0x151   :  { %v842_v50 = vmul.f32 0.0078125, %v766_v44  ;;  %v770_v47 = vrot.slane %v769_v45, 2 }
 0x152   :  { %v479_v20 = vpop.f32.mrf.mxu0 }
 0x153   :  { %v863_v32 = vmul.f32 %v842_v50, %v457_v58  ;;  %v864_v48 = vmul.f32 %v842_v50, %v461_v24  ;;  %v771_v49 = vadd.f32 %v770_v47, %v769_v45  ;;  %v774_v52 = vadd.f32 %v479_v20, %v475_v19 }
 0x154   :  { %v481_v53 = vpop.f32.mrf.mxu0 }
 0x155   :  { %v890_v55 = vpack.c.bf16 %v864_v48, %v863_v32  ;;  %v772_v54 = vrot.slane %v771_v49, 1  ;;  %v775_v57 = vrot.slane %v774_v52, 4 }
 0x156   :  { %v485_v59 = vpop.f32.mrf.mxu0 }
 0x157   :  { %v773_v60 = vadd.f32 %v772_v54, %v771_v49  ;;  %v776_v51 = vadd.f32 %v775_v57, %v774_v52  ;;  %2563 = vmatmul.mubr.bf16.gmra.mxu1 %v890_v55  ;;  %v3087_v57 = vpop.f32.mrf.mxu1 }
 0x158   :  { %v487_v61 = vpop.f32.mrf.mxu0 }
 0x159   :  { %v843_v62 = vmul.f32 0.0078125, %v773_v60  ;;  %v777_v63 = vrot.slane %v776_v51, 2 }
 0x15a   :  { %v489_v0 = vpop.f32.mrf.mxu0 }
 0x15b   :  { %v865_v1 = vmul.f32 %v843_v62, %v467_v8  ;;  %v866_v3 = vmul.f32 %v843_v62, %v471_v40  ;;  %v778_v4 = vadd.f32 %v777_v63, %v776_v51  ;;  %v781_v5 = vadd.f32 %v489_v0, %v485_v59 }
 0x15c   :  { %v491_v6 = vpop.f32.mrf.mxu0 }
 0x15d   :  { %v891_v7 = vpack.c.bf16 %v866_v3, %v865_v1  ;;  %v779_v9 = vrot.slane %v778_v4, 1  ;;  %v782_v10 = vrot.slane %v781_v5, 4  ;;  %v3089_v3 = vpop.f32.mrf.mxu1 }
 0x15e   :  { %v495_v56 = vpop.f32.mrf.mxu0 }
 0x15f   :  { %v780_v11 = vadd.f32 %v779_v9, %v778_v4  ;;  %v783_v12 = vadd.f32 %v782_v10, %v781_v5  ;;  %2566 = vmatprep.mubr.bf16.mxu1 %v891_v7  ;;  %v3094_v5 = vld [vmem:[%s3549_s5] sm:$0x1] }
 0x160   :  { %v497_v13 = vpop.f32.mrf.mxu0  ;;  %2640 = vmatprep.subr.msk.bf16.mxu0 %vm1834_vm0, %v3094_v5 }
 0x161   :  { %v844_v58 = vmul.f32 0.0078125, %v780_v11  ;;  %v784_v14 = vrot.slane %v783_v12, 2 }
 0x162   :  { %v499_v15 = vpop.f32.mrf.mxu0 }
 0x163   :  { %v867_v16 = vmul.f32 %v844_v58, %v477_v46  ;;  %v868_v17 = vmul.f32 %v844_v58, %v481_v53  ;;  %v785_v18 = vadd.f32 %v784_v14, %v783_v12  ;;  %v788_v21 = vadd.f32 %v499_v15, %v495_v56  ;;  %v3098_v12 = vpop.f32.mrf.mxu1 }
 0x164   :  { %v501_v22 = vpop.f32.mrf.mxu0 }
 0x165   :  { %v892_v23 = vpack.c.bf16 %v868_v17, %v867_v16  ;;  %v786_v24 = vrot.slane %v785_v18, 1  ;;  %v789_v25 = vrot.slane %v788_v21, 4 }
 0x166   :  { %v505_v26 = vpop.f32.mrf.mxu0 }
 0x167   :  { %v787_v27 = vadd.f32 %v786_v24, %v785_v18  ;;  %v790_v2 = vadd.f32 %v789_v25, %v788_v21  ;;  %2567 = vmatmul.mubr.bf16.gmra.mxu1 %v892_v23 }
 0x168   :  { %v507_v28 = vpop.f32.mrf.mxu0 }
 0x169   :  { %v845_v29 = vmul.f32 0.0078125, %v787_v27  ;;  %v791_v30 = vrot.slane %v790_v2, 2 }
 0x16a   :  { %v509_v8 = vpop.f32.mrf.mxu0 }
 0x16b   :  { %v869_v31 = vmul.f32 %v845_v29, %v487_v61  ;;  %v870_v33 = vmul.f32 %v845_v29, %v491_v6  ;;  %v792_v34 = vadd.f32 %v791_v30, %v790_v2  ;;  %v795_v35 = vadd.f32 %v509_v8, %v505_v26 }
 0x16c   :  { %v511_v36 = vpop.f32.mrf.mxu0 }
 0x16d   :  { %v893_v37 = vpack.c.bf16 %v870_v33, %v869_v31  ;;  %v793_v38 = vrot.slane %v792_v34, 1  ;;  %v796_v39 = vrot.slane %v795_v35, 4 }
 0x16e   :  { %v515_v40 = vpop.f32.mrf.mxu0 }
 0x16f   :  { %v794_v41 = vadd.f32 %v793_v38, %v792_v34  ;;  %v797_v42 = vadd.f32 %v796_v39, %v795_v35  ;;  %2570 = vmatprep.mubr.bf16.mxu1 %v893_v37 }
 0x170   :  { %v517_v43 = vpop.f32.mrf.mxu0 }
 0x171   :  { %v846_v19 = vmul.f32 0.0078125, %v794_v41  ;;  %v798_v44 = vrot.slane %v797_v42, 2 }
 0x172   :  { %v519_v45 = vpop.f32.mrf.mxu0 }
 0x173   :  { %v871_v46 = vmul.f32 %v846_v19, %v497_v13  ;;  %v872_v50 = vmul.f32 %v846_v19, %v501_v22  ;;  %v799_v47 = vadd.f32 %v798_v44, %v797_v42  ;;  %v802_v20 = vadd.f32 %v519_v45, %v515_v40  ;;  %v3100_v22 = vpop.f32.mrf.mxu1 }
 0x174   :  { %v521_v32 = vpop.f32.mrf.mxu0 }
 0x175   :  { %v894_v48 = vpack.c.bf16 %v872_v50, %v871_v46  ;;  %v800_v49 = vrot.slane %v799_v47, 1  ;;  %v803_v52 = vrot.slane %v802_v20, 4  ;;  %v3102_v29 = vpop.f32.mrf.mxu1 }
 0x176   :  { %v525_v53 = vpop.f32.mrf.mxu0 }
 0x177   :  { %v801_v55 = vadd.f32 %v800_v49, %v799_v47  ;;  %v804_v54 = vadd.f32 %v803_v52, %v802_v20  ;;  %2571 = vmatmul.mubr.bf16.gmra.mxu1 %v894_v48  ;;  %v3104_v38 = vpop.f32.mrf.mxu1 }
 0x178   :  { %v527_v59 = vpop.f32.mrf.mxu0 }
 0x179   :  { %v847_v60 = vmul.f32 0.0078125, %v801_v55  ;;  %v805_v51 = vrot.slane %v804_v54, 2  ;;  %v3106_v45 = vpop.f32.mrf.mxu1 }
 0x17a   :  { %v529_v61 = vpop.f32.mrf.mxu0 }
 0x17b   :  { %v873_v62 = vmul.f32 %v847_v60, %v507_v28  ;;  %v874_v63 = vmul.f32 %v847_v60, %v511_v36  ;;  %v806_v0 = vadd.f32 %v805_v51, %v804_v54  ;;  %v809_v1 = vadd.f32 %v529_v61, %v525_v53  ;;  %v3108_v53 = vpop.f32.mrf.mxu1 }
 0x17c   :  { %v531_v4 = vpop.f32.mrf.mxu0 }
 0x17d   :  { %v895_v6 = vpack.c.bf16 %v874_v63, %v873_v62  ;;  %v807_v7 = vrot.slane %v806_v0, 1  ;;  %v810_v9 = vrot.slane %v809_v1, 4  ;;  %v3110_v61 = vpop.f32.mrf.mxu1 }
 0x17e   :  { %v535_v10 = vpop.f32.mrf.mxu0  ;;  %3552 = vst [vmem:[#allocation15_spill] sm:$0xff] %v3110_v61 }
 0x17f   :  { %v808_v56 = vadd.f32 %v807_v7, %v806_v0  ;;  %v811_v11 = vadd.f32 %v810_v9, %v809_v1  ;;  %2574 = vmatprep.mubr.bf16.mxu1 %v895_v6  ;;  %v3112_v6 = vpop.f32.mrf.mxu1 }
 0x180   :  { %v537_v13 = vpop.f32.mrf.mxu0 }
 0x181   :  { %v848_v58 = vmul.f32 0.0078125, %v808_v56  ;;  %v812_v14 = vrot.slane %v811_v11, 2  ;;  %v3114_v56 = vpop.f32.mrf.mxu1 }
 0x182   :  { %v539_v15 = vpop.f32.mrf.mxu0 }
 0x183   :  { %v875_v16 = vmul.f32 %v848_v58, %v517_v43  ;;  %v876_v17 = vmul.f32 %v848_v58, %v521_v32  ;;  %v813_v18 = vadd.f32 %v812_v14, %v811_v11  ;;  %v816_v21 = vadd.f32 %v539_v15, %v535_v10  ;;  %v3116_v15 = vpop.f32.mrf.mxu1 }
 0x184   :  { %v541_v23 = vpop.f32.mrf.mxu0 }
 0x185   :  { %v896_v24 = vpack.c.bf16 %v876_v17, %v875_v16  ;;  %v814_v25 = vrot.slane %v813_v18, 1  ;;  %v817_v26 = vrot.slane %v816_v21, 4  ;;  %v3118_v17 = vpop.f32.mrf.mxu1 }
 0x186   :  { %v545_v27 = vpop.f32.mrf.mxu0  ;;  %3553 = vst [vmem:[#allocation16_spill] sm:$0xff] %v3118_v17 }
 0x187   :  { %v815_v2 = vadd.f32 %v814_v25, %v813_v18  ;;  %v818_v28 = vadd.f32 %v817_v26, %v816_v21  ;;  %2575 = vmatmul.mubr.bf16.gmra.mxu1 %v896_v24  ;;  %v3120_v18 = vpop.f32.mrf.mxu1  ;;  %v1836_v26 = vsel %vm1834_vm0, %v3094_v5, 0 }
 0x188   :  { %v547_v30 = vpop.f32.mrf.mxu0  ;;  %3554 = vst [vmem:[#allocation17_spill] sm:$0xff] %v3120_v18  ;;  %2587 = vmatpush3.bf16.msra.mxu0 %v1836_v26 }
 0x189   :  { %v849_v8 = vmul.f32 0.0078125, %v815_v2  ;;  %v819_v31 = vrot.slane %v818_v28, 2  ;;  %v3122_v21 = vpop.f32.mrf.mxu1 }
 0x18a   :  { %v549_v33 = vpop.f32.mrf.mxu0  ;;  %3555 = vst [vmem:[#allocation18_spill] sm:$0xff] %v3122_v21 }
 0x18b   :  { %v877_v34 = vmul.f32 %v849_v8, %v527_v59  ;;  %v878_v35 = vmul.f32 %v849_v8, %v531_v4  ;;  %v820_v36 = vadd.f32 %v819_v31, %v818_v28  ;;  %v823_v37 = vadd.f32 %v549_v33, %v545_v27 }
 0x18c   :  { %v551_v39 = vpop.f32.mrf.mxu0 }
 0x18d   :  { %v897_v40 = vpack.c.bf16 %v878_v35, %v877_v34  ;;  %v821_v41 = vrot.slane %v820_v36, 1  ;;  %v824_v42 = vrot.slane %v823_v37, 4 }
 0x18e   :  { %v555_v43 = vpop.f32.mrf.mxu0 }
 0x18f   :  { %v822_v19 = vadd.f32 %v821_v41, %v820_v36  ;;  %v825_v44 = vadd.f32 %v824_v42, %v823_v37  ;;  %2578 = vmatprep.mubr.bf16.mxu1 %v897_v40  ;;  %v1145_v41 = vpop.permute.xlu1 %1144  ;;  %v1134_v42 = vpop.permute.xlu0 %1133 }
 0x190   :  { %v557_v46 = vpop.f32.mrf.mxu0 }
 0x191   :  { %v850_v50 = vmul.f32 0.0078125, %v822_v19  ;;  %v826_v47 = vrot.slane %v825_v44, 2 }
 0x192   :  { %v559_v20 = vpop.f32.mrf.mxu0 }
 0x193   :  { %v879_v32 = vmul.f32 %v850_v50, %v537_v13  ;;  %v880_v48 = vmul.f32 %v850_v50, %v541_v23  ;;  %v827_v49 = vadd.f32 %v826_v47, %v825_v44  ;;  %v830_v52 = vadd.f32 %v559_v20, %v555_v43  ;;  %v3124_v23 = vpop.f32.mrf.mxu1  ;;  %v1149_v44 = vpop.permute.xlu1 %1148 }
 0x194   :  { %v561_v13 = vpop.f32.mrf.mxu0  ;;  %v1138_v47 = vpop.permute.xlu0 %1137 }
 0x195   :  { %v898_v55 = vpack.c.bf16 %v880_v48, %v879_v32  ;;  %v828_v54 = vrot.slane %v827_v49, 1  ;;  %v831_v59 = vrot.slane %v830_v52, 4  ;;  %v3126_v24 = vpop.f32.mrf.mxu1 }
 0x197   :  { %v829_v60 = vadd.f32 %v828_v54, %v827_v49  ;;  %v832_v51 = vadd.f32 %v831_v59, %v830_v52  ;;  %2579 = vmatmul.mubr.bf16.gmra.mxu1 %v898_v55  ;;  %v3128_v25 = vpop.f32.mrf.mxu1 }
 0x199   :  { %v851_v62 = vmul.f32 0.0078125, %v829_v60  ;;  %v833_v63 = vrot.slane %v832_v51, 2  ;;  %v3132_v27 = vpop.f32.mrf.mxu1 }
 0x19b   :  { %v881_v0 = vmul.f32 %v851_v62, %v547_v30  ;;  %v882_v1 = vmul.f32 %v851_v62, %v551_v39  ;;  %v834_v4 = vadd.f32 %v833_v63, %v832_v51  ;;  %v3134_v2 = vpop.f32.mrf.mxu1  ;;  %v1156_v63 = vpop.permute.xlu0 %1155 }
 0x19d   :  { %v899_v7 = vpack.c.bf16 %v882_v1, %v881_v0  ;;  %v835_v9 = vrot.slane %v834_v4, 1  ;;  %v3136_v28 = vpop.f32.mrf.mxu1 }
 0x19e   :  { %3556 = vst [vmem:[#allocation19_spill] sm:$0xff] %v3136_v28 }
 0x19f   :  { %v836_v10 = vadd.f32 %v835_v9, %v834_v4  ;;  %2582 = vmatprep.mubr.bf16.mxu1 %v899_v7  ;;  %v3138_v30 = vpop.f32.mrf.mxu1  ;;  %v1160_v4 = vpop.permute.xlu1 %1159 }
 0x1a1   :  { %v852_v11 = vmul.f32 0.0078125, %v836_v10  ;;  %v3140_v8 = vpop.f32.mrf.mxu1 }
 0x1a3   :  { %v883_v58 = vmul.f32 %v852_v11, %v557_v46  ;;  %v884_v14 = vmul.f32 %v852_v11, %v561_v13  ;;  %v3142_v31 = vpop.f32.mrf.mxu1  ;;  %v1167_v13 = vpop.permute.xlu0 %1166 }
 0x1a5   :  { %v900_v16 = vpack.c.bf16 %v884_v14, %v883_v58  ;;  %v3144_v33 = vpop.f32.mrf.mxu1 }
 0x1a6   :  { %3557 = vst [vmem:[#allocation20_spill] sm:$0xff] %v3144_v33 }
 0x1a7   :  { %2583 = vmatmul.mubr.bf16.gmra.mxu1 %v900_v16  ;;  %v3146_v34 = vpop.f32.mrf.mxu1 }
 0x1a8   :  { %3558 = vst [vmem:[#allocation21_spill] sm:$0xff] %v3146_v34 }
 0x1a9   :  { %v3148_v35 = vpop.f32.mrf.mxu1 }
 0x1aa   :  { %3559 = vst [vmem:[#allocation22_spill] sm:$0xff] %v3148_v35 }
 0x1ab   :  { %v3150_v5 = vpop.f32.mrf.mxu1 }
 0x1ac   :  { %3560 = vst [vmem:[#allocation23_spill] sm:$0xff] %v3150_v5 }
 0x1ad   :  { %v3152_v36 = vpop.f32.mrf.mxu1 }
 0x1ae   :  { %3561 = vst [vmem:[#allocation24_spill] sm:$0xff] %v3152_v36 }
 0x1af   :  { %v3154_v37 = vpop.f32.mrf.mxu1 }
 0x1b0   :  { %3562 = vst [vmem:[#allocation25_spill] sm:$0xff] %v3154_v37 }
 0x1b1   :  { %v3156_v39 = vpop.f32.mrf.mxu1 }
 0x1b2   :  { %3563 = vst [vmem:[#allocation26_spill] sm:$0xff] %v3156_v39 }
 0x1b3   :  { %v3158_v40 = vpop.f32.mrf.mxu1 }
 0x1b4   :  { %3564 = vst [vmem:[#allocation27_spill] sm:$0xff] %v3158_v40 }
 0x1f7   :  { %v2556_v43 = vpop.f32.mrf.mxu1 }
 0x1f8   :  { %v1306_v46 = vadd.f32 %v2556_v43, %v1145_v41  ;;  %v1171_v41 = vpop.permute.xlu1 %1170 }
 0x1f9   :  { %v999_v19 = vpop.f32.mrf.mxu1 }
 0x1fa   :  { %v1304_v20 = vadd.f32 %v1134_v42, %v999_v19  ;;  %v1346_v49 = vsel %vm1336_vm1, %v1306_v46, -inf }
 0x1fb   :  { %v2557_v50 = vpop.f32.mrf.mxu1 }
 0x1fc   :  { %v1307_v32 = vadd.f32 %v2557_v50, %v1149_v44  ;;  %v1337_v59 = vsel %vm1336_vm1, %v1304_v20, -inf }
 0x1fd   :  { %v1002_v48 = vpop.f32.mrf.mxu1 }
 0x1fe   :  { %v1347_v52 = vsel %vm1336_vm1, %v1307_v32, -inf  ;;  %v1305_v55 = vadd.f32 %v1138_v47, %v1002_v48 }
 0x1ff   :  { %v1348_v54 = vmax.f32 %v1346_v49, %v1347_v52 }
 0x200   :  { %v1338_v60 = vsel %vm1336_vm1, %v1305_v55, -inf }
 0x201   :  { %v1349_v51 = vrot.slane %v1348_v54, 4  ;;  %v1339_v62 = vmax.f32 %v1337_v59, %v1338_v60 }
 0x203   :  { %v1350_v0 = vmax.f32 %v1348_v54, %v1349_v51  ;;  %v1340_v1 = vrot.slane %v1339_v62, 4 }
 0x205   :  { %v1351_v7 = vrot.slane %v1350_v0, 2  ;;  %v1341_v9 = vmax.f32 %v1339_v62, %v1340_v1 }
 0x207   :  { %v1352_v10 = vmax.f32 %v1350_v0, %v1351_v7  ;;  %v1342_v11 = vrot.slane %v1341_v9, 2  ;;  %v2560_v58 = vpop.f32.mrf.mxu1 }
 0x208   :  { %v3164_v42 = vadd.f32 %v2560_v58, %v1167_v13 }
 0x209   :  { %v1353_v14 = vrot.slane %v1352_v10, 1  ;;  %v1343_v16 = vmax.f32 %v1341_v9, %v1342_v11  ;;  %v1015_v26 = vpop.f32.mrf.mxu1 }
 0x20a   :  { %v3166_v50 = vadd.f32 %v1156_v63, %v1015_v26  ;;  %v1364_v59 = vsel %vm1336_vm1, %v3164_v42, -inf }
 0x20b   :  { %v1354_v43 = vmax.f32 %v1352_v10, %v1353_v14  ;;  %v1344_v19 = vrot.slane %v1343_v16, 1  ;;  %v2561_v44 = vpop.f32.mrf.mxu1 }
 0x20c   :  { %v1311_v47 = vadd.f32 %v2561_v44, %v1171_v41  ;;  %v1355_v9 = vsel %vm1336_vm1, %v3166_v50, -inf }
 0x20d   :  { %v1483_v48 = vsub.f32 %v1306_v46, %v1354_v43  ;;  %v1484_v49 = vsub.f32 %v1307_v32, %v1354_v43  ;;  %v1345_v52 = vmax.f32 %v1343_v16, %v1344_v19  ;;  %v1018_v54 = vpop.f32.mrf.mxu1  ;;  %v1178_v46 = vpop.permute.xlu0 %1177 }
 0x20e   :  { %v1365_v60 = vsel %vm1336_vm1, %v1311_v47, -inf  ;;  %v1309_v51 = vadd.f32 %v1160_v4, %v1018_v54  ;;  %v1182_v4 = vpop.permute.xlu1 %1181 }
 0x20f   :  { %v1517_v62 = vmul.f32 1.442695, %v1483_v48  ;;  %v1519_v0 = vmul.f32 1.442695, %v1484_v49  ;;  %v1481_v1 = vsub.f32 %v1304_v20, %v1345_v52  ;;  %v1482_v7 = vsub.f32 %v1305_v55, %v1345_v52 }
 0x210   :  { %v1366_v63 = vmax.f32 %v1364_v59, %v1365_v60  ;;  %v1356_v10 = vsel %vm1336_vm1, %v1309_v51, -inf }
 0x211   :  { %2719 = vpow2.f32 %v1517_v62  ;;  %v1513_v32 = vmul.f32 1.442695, %v1481_v1  ;;  %v1515_v11 = vmul.f32 1.442695, %v1482_v7  ;;  %v1357_v13 = vmax.f32 %v1355_v9, %v1356_v10  ;;  %v1189_v26 = vpop.permute.xlu0 %1188 }
 0x212   :  { %2721 = vpow2.f32 %v1519_v0  ;;  %v1367_v58 = vrot.slane %v1366_v63, 4  ;;  %v1193_v52 = vpop.permute.xlu1 %1192 }
 0x213   :  { %2723 = vpow2.f32 %v1513_v32  ;;  %v1358_v14 = vrot.slane %v1357_v13, 4 }
 0x214   :  { %2725 = vpow2.f32 %v1515_v11  ;;  %v1368_v16 = vmax.f32 %v1366_v63, %v1367_v58 }
 0x215   :  { %v1359_v20 = vmax.f32 %v1357_v13, %v1358_v14 }
 0x216   :  { %v1369_v55 = vrot.slane %v1368_v16, 2 }
 0x217   :  { %v1360_v41 = vrot.slane %v1359_v20, 2  ;;  %v2564_v43 = vpop.f32.mrf.mxu1 }
 0x218   :  { %v1370_v19 = vmax.f32 %v1368_v16, %v1369_v55  ;;  %v3174_v48 = vadd.f32 %v2564_v43, %v1189_v26 }
 0x219   :  { %v1361_v44 = vmax.f32 %v1359_v20, %v1360_v41  ;;  %v1031_v49 = vpop.f32.mrf.mxu1 }
 0x21a   :  { %v1371_v54 = vrot.slane %v1370_v19, 1  ;;  %v3176_v59 = vadd.f32 %v1178_v46, %v1031_v49  ;;  %v1382_v9 = vsel %vm1336_vm1, %v3174_v48, -inf }
 0x21b   :  { %v1362_v60 = vrot.slane %v1361_v44, 1  ;;  %v2565_v62 = vpop.f32.mrf.mxu1 }
 0x21c   :  { %v1372_v0 = vmax.f32 %v1370_v19, %v1371_v54  ;;  %v3178_v1 = vadd.f32 %v2565_v62, %v1193_v52  ;;  %v1373_v63 = vsel %vm1336_vm1, %v3176_v59, -inf  ;;  %v1200_v19 = vpop.permute.xlu0 %1199 }
 0x21d   :  { %v1363_v7 = vmax.f32 %v1361_v44, %v1362_v60  ;;  %v1034_v10 = vpop.f32.mrf.mxu1 }
 0x21e   :  { %v3184_v32 = vpop.eup %2719  ;;  %v1487_v11 = vsub.f32 %v3164_v42, %v1372_v0  ;;  %v1488_v13 = vsub.f32 %v1311_v47, %v1372_v0  ;;  %v1383_v46 = vsel %vm1336_vm1, %v3178_v1, -inf  ;;  %v3189_v58 = vadd.f32 %v1182_v4, %v1034_v10 }
 0x21f   :  { %v3191_v14 = vpop.eup %2721  ;;  %v1586_v16 = vsel %vm1336_vm1, %v3184_v32, 0.0  ;;  %v1485_v20 = vsub.f32 %v3166_v50, %v1363_v7  ;;  %v1486_v55 = vsub.f32 %v1309_v51, %v1363_v7  ;;  %v1384_v26 = vmax.f32 %v1382_v9, %v1383_v46  ;;  %v1204_v9 = vpop.permute.xlu1 %1203 }
 0x220   :  { %v3196_v41 = vpop.eup %2723  ;;  %v1587_v42 = vsel %vm1336_vm1, %v3191_v14, 0.0  ;;  %v1525_v47 = vmul.f32 1.442695, %v1487_v11  ;;  %v1527_v43 = vmul.f32 1.442695, %v1488_v13  ;;  %v1374_v4 = vsel %vm1336_vm1, %v3189_v58, -inf }
 0x221   :  { %v3202_v44 = vpop.eup %2725  ;;  %v1588_v49 = vadd.f32 %v1587_v42, %v1586_v16  ;;  %v1577_v52 = vsel %vm1336_vm1, %v3196_v41, 0.0  ;;  %v1521_v50 = vmul.f32 1.442695, %v1485_v20  ;;  %v1523_v51 = vmul.f32 1.442695, %v1486_v55  ;;  %v1211_v20 = vpop.permute.xlu0 %1210 }
 0x222   :  { %v1578_v54 = vsel %vm1336_vm1, %v3202_v44, 0.0  ;;  %2727 = vpow2.f32 %v1525_v47  ;;  %v1385_v60 = vrot.slane %v1384_v26, 4  ;;  %v1375_v62 = vmax.f32 %v1373_v63, %v1374_v4 }
 0x223   :  { %v1589_v0 = vrot.slane %v1588_v49, 4  ;;  %v1579_v7 = vadd.f32 %v1578_v54, %v1577_v52  ;;  %2729 = vpow2.f32 %v1527_v43  ;;  %v1215_v52 = vpop.permute.xlu1 %1214 }
 0x224   :  { %2731 = vpow2.f32 %v1521_v50  ;;  %v1386_v10 = vmax.f32 %v1384_v26, %v1385_v60  ;;  %v1376_v11 = vrot.slane %v1375_v62, 4 }
 0x225   :  { %v1590_v13 = vadd.f32 %v1589_v0, %v1588_v49  ;;  %v1580_v46 = vrot.slane %v1579_v7, 4  ;;  %2733 = vpow2.f32 %v1523_v51 }
 0x226   :  { %v1387_v16 = vrot.slane %v1386_v10, 2  ;;  %v1377_v42 = vmax.f32 %v1375_v62, %v1376_v11 }
 0x227   :  { %v1591_v55 = vrot.slane %v1590_v13, 2  ;;  %v1581_v40 = vadd.f32 %v1580_v46, %v1579_v7  ;;  %v2568_v37 = vpop.f32.mrf.mxu1 }
 0x228   :  { %v1388_v39 = vmax.f32 %v1386_v10, %v1387_v16  ;;  %v1378_v47 = vrot.slane %v1377_v42, 2  ;;  %v3208_v4 = vadd.f32 %v2568_v37, %v1211_v20 }
 0x229   :  { %v1592_v36 = vadd.f32 %v1591_v55, %v1590_v13  ;;  %v1582_v63 = vrot.slane %v1581_v40, 2  ;;  %v1047_v43 = vpop.f32.mrf.mxu1  ;;  %v1222_v55 = vpop.permute.xlu0 %1221 }
 0x22a   :  { %v1389_v50 = vrot.slane %v1388_v39, 1  ;;  %v1379_v26 = vmax.f32 %v1377_v42, %v1378_v47  ;;  %v3210_v54 = vadd.f32 %v1200_v19, %v1047_v43  ;;  %v1400_v13 = vsel %vm1336_vm1, %v3208_v4, -inf }
 0x22b   :  { %v1593_v49 = vrot.slane %v1592_v36, 1  ;;  %v1583_v51 = vadd.f32 %v1582_v63, %v1581_v40  ;;  %v2569_v60 = vpop.f32.mrf.mxu1 }
 0x22c   :  { %v1390_v62 = vmax.f32 %v1388_v39, %v1389_v50  ;;  %v1380_v0 = vrot.slane %v1379_v26, 1  ;;  %v3212_v11 = vadd.f32 %v2569_v60, %v1215_v52  ;;  %v1391_v37 = vsel %vm1336_vm1, %v3210_v54, -inf }
 0x22d   :  { %v1594_v7 = vadd.f32 %v1593_v49, %v1592_v36  ;;  %v1584_v10 = vrot.slane %v1583_v51, 1  ;;  %v1050_v46 = vpop.f32.mrf.mxu1 }
 0x22e   :  { %v1491_v16 = vsub.f32 %v3174_v48, %v1390_v62  ;;  %v1492_v19 = vsub.f32 %v3178_v1, %v1390_v62  ;;  %v1381_v42 = vmax.f32 %v1379_v26, %v1380_v0  ;;  %v1401_v39 = vsel %vm1336_vm1, %v3212_v11, -inf }
 0x22f   :  { %v3222_v40 = vpop.eup %2727  ;;  %2735 = vrcp.f32 %v1594_v7  ;;  %v1402_v36 = vmax.f32 %v1400_v13, %v1401_v39  ;;  %v3224_v20 = vadd.f32 %v1204_v9, %v1050_v46  ;;  %v1585_v47 = vadd.f32 %v1584_v10, %v1583_v51  ;;  %v1226_v46 = vpop.permute.xlu1 %1225 }
 0x230   :  { %v3226_v63 = vpop.eup %2729  ;;  %v1604_v43 = vsel %vm1336_vm1, %v3222_v40, 0.0  ;;  %v1533_v48 = vmul.f32 1.442695, %v1491_v16  ;;  %v1535_v52 = vmul.f32 1.442695, %v1492_v19  ;;  %v1489_v1 = vsub.f32 %v3176_v59, %v1381_v42  ;;  %v1233_v39 = vpop.permute.xlu0 %1232 }
 0x231   :  { %v3231_v50 = vpop.eup %2731  ;;  %v1605_v26 = vsel %vm1336_vm1, %v3226_v63, 0.0  ;;  %v1490_v49 = vsub.f32 %v3189_v58, %v1381_v42  ;;  %v1403_v9 = vrot.slane %v1402_v36, 4  ;;  %v1392_v51 = vsel %vm1336_vm1, %v3224_v20, -inf }
 0x232   :  { %v3238_v60 = vpop.eup %2733  ;;  %v1606_v62 = vadd.f32 %v1605_v26, %v1604_v43  ;;  %v1595_v0 = vsel %vm1336_vm1, %v3231_v50, 0.0  ;;  %2737 = vpow2.f32 %v1533_v48  ;;  %v1529_v7 = vmul.f32 1.442695, %v1489_v1 }
 0x233   :  { %v1596_v59 = vsel %vm1336_vm1, %v3238_v60, 0.0  ;;  %2739 = vpow2.f32 %v1535_v52  ;;  %v1531_v10 = vmul.f32 1.442695, %v1490_v49  ;;  %v1404_v13 = vmax.f32 %v1402_v36, %v1403_v9  ;;  %v1237_v9 = vpop.permute.xlu1 %1236 }
 0x234   :  { %v1607_v58 = vrot.slane %v1606_v62, 4  ;;  %v1597_v16 = vadd.f32 %v1596_v59, %v1595_v0  ;;  %2741 = vpow2.f32 %v1529_v7  ;;  %v1393_v19 = vmax.f32 %v1391_v37, %v1392_v51 }
 0x235   :  { %2743 = vpow2.f32 %v1531_v10  ;;  %v1405_v42 = vrot.slane %v1404_v13, 2 }
 0x236   :  { %v1608_v43 = vadd.f32 %v1607_v58, %v1606_v62  ;;  %v1598_v26 = vrot.slane %v1597_v16, 4  ;;  %v1394_v5 = vrot.slane %v1393_v19, 4  ;;  %2745 = vrcp.f32 %v1585_v47 }
 0x237   :  { %v1406_v48 = vmax.f32 %v1404_v13, %v1405_v42  ;;  %v2572_v1 = vpop.f32.mrf.mxu1 }
 0x238   :  { %v1609_v34 = vrot.slane %v1608_v43, 2  ;;  %v1599_v17 = vadd.f32 %v1598_v26, %v1597_v16  ;;  %v1395_v35 = vmax.f32 %v1393_v19, %v1394_v5  ;;  %v3244_v52 = vadd.f32 %v2572_v1, %v1233_v39 }
 0x239   :  { %v1407_v36 = vrot.slane %v1406_v48, 1  ;;  %v1063_v49 = vpop.f32.mrf.mxu1 }
 0x23a   :  { %v3246_v0 = vadd.f32 %v1609_v34, %v1608_v43  ;;  %v1600_v37 = vrot.slane %v1599_v17, 2  ;;  %v1396_v51 = vrot.slane %v1395_v35, 2  ;;  %v1418_v62 = vsel %vm1336_vm1, %v3244_v52, -inf }
 0x23b   :  { %v1408_v7 = vmax.f32 %v1406_v48, %v1407_v36  ;;  %v3250_v59 = vadd.f32 %v1222_v55, %v1063_v49  ;;  %v2573_v47 = vpop.f32.mrf.mxu1  ;;  %v1244_v49 = vpop.permute.xlu0 %1243 }
 0x23c   :  { %v2736_v10 = vpop.eup %2735  ;;  %v1601_v5 = vadd.f32 %v1600_v37, %v1599_v17  ;;  %v1397_v58 = vmax.f32 %v1395_v35, %v1396_v51  ;;  %v3253_v16 = vadd.f32 %v2573_v47, %v1237_v9 }
 0x23d   :  { %v3256_v19 = vmul.f32 %v2736_v10, %v3191_v14  ;;  %v1495_v34 = vsub.f32 %v3208_v4, %v1408_v7  ;;  %v1496_v42 = vsub.f32 %v3212_v11, %v1408_v7  ;;  %v1409_v39 = vsel %vm1336_vm1, %v3250_v59, -inf  ;;  %v1066_v55 = vpop.f32.mrf.mxu1 }
 0x23e   :  { %v1602_v43 = vrot.slane %v1601_v5, 1  ;;  %v1398_v26 = vrot.slane %v1397_v58, 1  ;;  %v1419_v48 = vsel %vm1336_vm1, %v3253_v16, -inf  ;;  %v3264_v17 = vadd.f32 %v1226_v46, %v1066_v55 }
 0x23f   :  { %v3266_v35 = vpop.eup %2737  ;;  %v1541_v1 = vmul.f32 1.442695, %v1495_v34  ;;  %v1543_v14 = vmul.f32 1.442695, %v1496_v42  ;;  %v1420_v36 = vmax.f32 %v1418_v62, %v1419_v48  ;;  %v1739_v4 = vmul.f32 %v2736_v10, %v3184_v32 }
 0x240   :  { %v3269_v11 = vpop.eup %2739  ;;  %v1622_v9 = vsel %vm1336_vm1, %v3266_v35, 0.0  ;;  %v1399_v37 = vmax.f32 %v1397_v58, %v1398_v26  ;;  %v1410_v51 = vsel %vm1336_vm1, %v3264_v17, -inf  ;;  %v1603_v7 = vadd.f32 %v1602_v43, %v1601_v5 }
 0x241   :  { %v3275_v46 = vpop.eup %2741  ;;  %v1623_v47 = vsel %vm1336_vm1, %v3269_v11, 0.0  ;;  %2747 = vpow2.f32 %v1541_v1  ;;  %v1421_v62 = vrot.slane %v1420_v36, 4  ;;  %v1411_v34 = vmax.f32 %v1409_v39, %v1410_v51  ;;  %v1248_v1 = vpop.permute.xlu1 %1247 }
 0x242   :  { %v3279_v42 = vpop.eup %2743  ;;  %v1624_v32 = vadd.f32 %v1623_v47, %v1622_v9  ;;  %v1613_v10 = vsel %vm1336_vm1, %v3275_v46, 0.0  ;;  %2749 = vpow2.f32 %v1543_v14  ;;  %v1493_v58 = vsub.f32 %v3210_v54, %v1399_v37  ;;  %v1255_v54 = vpop.permute.xlu0 %1254 }
 0x243   :  { %v2746_v55 = vpop.eup %2745  ;;  %v1614_v5 = vsel %vm1336_vm1, %v3279_v42, 0.0  ;;  %v1494_v43 = vsub.f32 %v3224_v20, %v1399_v37  ;;  %v1422_v26 = vmax.f32 %v1420_v36, %v1421_v62  ;;  %v1412_v48 = vrot.slane %v1411_v34, 4 }
 0x244   :  { %v1625_v13 = vrot.slane %v1624_v32, 4  ;;  %v1615_v39 = vadd.f32 %v1614_v5, %v1613_v10  ;;  %v1537_v51 = vmul.f32 1.442695, %v1493_v58  ;;  %v1737_v9 = vmul.f32 %v2746_v55, %v3196_v41 }
 0x245   :  { %v1539_v47 = vmul.f32 1.442695, %v1494_v43  ;;  %v1423_v33 = vrot.slane %v1422_v26, 2  ;;  %v1413_v21 = vmax.f32 %v1411_v34, %v1412_v48  ;;  %v1738_v14 = vmul.f32 %v2746_v55, %v3202_v44 }
 0x246   :  { %v1626_v61 = vadd.f32 %v1625_v13, %v1624_v32  ;;  %v1616_v18 = vrot.slane %v1615_v39, 4  ;;  %2751 = vpow2.f32 %v1537_v51  ;;  %v1770_v28 = vpack.c.bf16 %v3256_v19, %v1739_v4  ;;  %v1259_v13 = vpop.permute.xlu1 %1258 }
 0x247   :  { %2753 = vpow2.f32 %v1539_v47  ;;  %v1424_v20 = vmax.f32 %v1422_v26, %v1423_v33  ;;  %v1414_v36 = vrot.slane %v1413_v21, 2  ;;  %v1769_v37 = vpack.c.bf16 %v1738_v14, %v1737_v9  ;;  %v2576_v62 = vpop.f32.mrf.mxu1 }
 0x248   :  { %v1627_v10 = vrot.slane %v1626_v61, 2  ;;  %v1617_v58 = vadd.f32 %v1616_v18, %v1615_v39  ;;  %v3290_v5 = vadd.f32 %v2576_v62, %v1255_v54  ;;  %2755 = vrcp.f32 %v1603_v7  ;;  %v1266_v62 = vpop.permute.xlu0 %1265 }
 0x249   :  { %v1425_v41 = vrot.slane %v1424_v20, 1  ;;  %v1415_v34 = vmax.f32 %v1413_v21, %v1414_v36  ;;  %2588 = vmatprep.mubr.msk.bf16.mxu0 %vm1336_vm1, %v1769_v37  ;;  %v1079_v44 = vpop.f32.mrf.mxu1  ;;  %v3565_v32 = vrot.slane %v3246_v0, 1 }
 0x24a   :  { %v1628_v4 = vadd.f32 %v1627_v10, %v1626_v61  ;;  %v1618_v33 = vrot.slane %v1617_v58, 2  ;;  %2589 = vmatmul.mubr.msk.bf16.vlgmr.msra.gmra.mxu0 %vm1336_vm1, %v1770_v28  ;;  %v3297_v55 = vadd.f32 %v1244_v49, %v1079_v44  ;;  %v1436_v21 = vsel %vm1336_vm1, %v3290_v5, -inf }
 0x24b   :  { %v1612_v19 = vadd.f32 %v3565_v32, %v3246_v0  ;;  %v1426_v18 = vmax.f32 %v1424_v20, %v1425_v41  ;;  %v1416_v43 = vrot.slane %v1415_v34, 1  ;;  %v2577_v26 = vpop.f32.mrf.mxu1 }
 0x24c   :  { %v1619_v7 = vadd.f32 %v1618_v33, %v1617_v58  ;;  %v3301_v48 = vadd.f32 %v2577_v26, %v1259_v13  ;;  %v1629_v39 = vrot.slane %v1628_v4, 1  ;;  %v1427_v47 = vsel %vm1336_vm1, %v3297_v55, -inf  ;;  %v3325_v26 = vpop.permute.xlu1 %1269 }
 0x24d   :  { %2757 = vrcp.f32 %v1612_v19  ;;  %v1499_v51 = vsub.f32 %v3244_v52, %v1426_v18  ;;  %v1500_v61 = vsub.f32 %v3253_v16, %v1426_v18  ;;  %v1417_v0 = vmax.f32 %v1415_v34, %v1416_v43  ;;  %v1082_v9 = vpop.f32.mrf.mxu1 }
 0x24e   :  { %v3305_v28 = vpop.eup %2747  ;;  %v1620_v49 = vrot.slane %v1619_v7, 1  ;;  %v1437_v14 = vsel %vm1336_vm1, %v3301_v48, -inf  ;;  %v3311_v54 = vadd.f32 %v1248_v1, %v1082_v9 }
 0x24f   :  { %v3313_v20 = vpop.eup %2749  ;;  %v1640_v52 = vsel %vm1336_vm1, %v3305_v28, 0.0  ;;  %v1549_v36 = vmul.f32 1.442695, %v1499_v51  ;;  %v1551_v16 = vmul.f32 1.442695, %v1500_v61  ;;  %v1497_v37 = vsub.f32 %v3250_v59, %v1417_v0 }
 0x250   :  { %v1641_v10 = vsel %vm1336_vm1, %v3313_v20, 0.0  ;;  %v1498_v58 = vsub.f32 %v3264_v17, %v1417_v0  ;;  %v1438_v41 = vmax.f32 %v1436_v21, %v1437_v14  ;;  %v1428_v1 = vsel %vm1336_vm1, %v3311_v54, -inf }
 0x251   :  { %v1642_v34 = vadd.f32 %v1641_v10, %v1640_v52  ;;  %2759 = vpow2.f32 %v1549_v36  ;;  %v1545_v44 = vmul.f32 1.442695, %v1497_v37  ;;  %v1429_v13 = vmax.f32 %v1427_v47, %v1428_v1  ;;  %v1277_v47 = vpop.permute.xlu0 %1276 }
 0x252   :  { %2761 = vpow2.f32 %v1551_v16  ;;  %v1547_v32 = vmul.f32 1.442695, %v1498_v58  ;;  %v1439_v19 = vrot.slane %v1438_v41, 4  ;;  %v1621_v33 = vadd.f32 %v1620_v49, %v1619_v7 }
 0x253   :  { %v3323_v18 = vpop.eup %2751  ;;  %v1643_v59 = vrot.slane %v1642_v34, 4  ;;  %2763 = vpow2.f32 %v1545_v44  ;;  %v1430_v43 = vrot.slane %v1429_v13, 4  ;;  %v1630_v17 = vadd.f32 %v1629_v39, %v1628_v4 }
 0x254   :  { %v3327_v21 = vpop.eup %2753  ;;  %v1631_v51 = vsel %vm1336_vm1, %v3323_v18, 0.0  ;;  %2765 = vpow2.f32 %v1547_v32  ;;  %v1440_v61 = vmax.f32 %v1438_v41, %v1439_v19 }
 0x255   :  { %v2756_v0 = vpop.eup %2755  ;;  %v1644_v9 = vadd.f32 %v1643_v59, %v1642_v34  ;;  %v1632_v7 = vsel %vm1336_vm1, %v3327_v21, 0.0  ;;  %v1431_v49 = vmax.f32 %v1429_v13, %v1430_v43  ;;  %2767 = vrcp.f32 %v1621_v33 }
 0x256   :  { %v1633_v14 = vadd.f32 %v1632_v7, %v1631_v51  ;;  %v1441_v52 = vrot.slane %v1440_v61, 2  ;;  %v1741_v36 = vmul.f32 %v2756_v0, %v3231_v50  ;;  %v1742_v4 = vmul.f32 %v2756_v0, %v3238_v60  ;;  %v1281_v50 = vpop.permute.xlu1 %1280 }
 0x257   :  { %v1645_v39 = vrot.slane %v1644_v9, 2  ;;  %v1432_v16 = vrot.slane %v1431_v49, 2  ;;  %v2580_v37 = vpop.f32.mrf.mxu1  ;;  %2769 = vrcp.f32 %v1630_v17 }
 0x258   :  { %v1634_v58 = vrot.slane %v1633_v14, 4  ;;  %v1442_v41 = vmax.f32 %v1440_v61, %v1441_v52  ;;  %v1771_v1 = vpack.c.bf16 %v1742_v4, %v1741_v36  ;;  %v3335_v34 = vadd.f32 %v2580_v37, %v1277_v47 }
 0x259   :  { %v1646_v44 = vadd.f32 %v1645_v39, %v1644_v9  ;;  %v1433_v13 = vmax.f32 %v1431_v49, %v1432_v16  ;;  %v1095_v33 = vpop.f32.mrf.mxu1 }
 0x25a   :  { %v2758_v10 = vpop.eup %2757  ;;  %v1635_v59 = vadd.f32 %v1634_v58, %v1633_v14  ;;  %v1443_v60 = vrot.slane %v1442_v41, 1  ;;  %2592 = vmatprep.mubr.msk.bf16.mxu0 %vm1336_vm1, %v1771_v1  ;;  %v3340_v43 = vadd.f32 %v1266_v62, %v1095_v33 }
 0x25b   :  { %v1743_v32 = vmul.f32 %v2758_v10, %v3222_v40  ;;  %v1744_v19 = vmul.f32 %v2758_v10, %v3226_v63  ;;  %v1647_v17 = vrot.slane %v1646_v44, 1  ;;  %v1434_v51 = vrot.slane %v1433_v13, 1  ;;  %v2581_v0 = vpop.f32.mrf.mxu1 }
 0x25c   :  { %v1636_v7 = vrot.slane %v1635_v59, 2  ;;  %v1444_v47 = vmax.f32 %v1442_v41, %v1443_v60  ;;  %v3342_v9 = vadd.f32 %v2581_v0, %v1281_v50  ;;  %v1454_v40 = vsel %vm1336_vm1, %v3335_v34, -inf }
 0x25d   :  { %v1772_v61 = vpack.c.bf16 %v1744_v19, %v1743_v32  ;;  %v1435_v49 = vmax.f32 %v1433_v13, %v1434_v51  ;;  %v1445_v63 = vsel %vm1336_vm1, %v3340_v43, -inf  ;;  %v1648_v14 = vadd.f32 %v1647_v17, %v1646_v44  ;;  %v1098_v1 = vpop.f32.mrf.mxu1  ;;  %v1288_v44 = vpop.permute.xlu0 %1287 }
 0x25e   :  { %v3349_v62 = vpop.eup %2759  ;;  %v1637_v52 = vadd.f32 %v1636_v7, %v1635_v59  ;;  %v1503_v36 = vsub.f32 %v3290_v5, %v1444_v47  ;;  %v1504_v4 = vsub.f32 %v3301_v48, %v1444_v47  ;;  %v1455_v39 = vsel %vm1336_vm1, %v3342_v9, -inf }
 0x25f   :  { %2593 = vmatmul.mubr.msk.bf16.gmra.mxu0 %vm1336_vm1, %v1772_v61  ;;  %v3355_v16 = vpop.eup %2761  ;;  %v1658_v37 = vsel %vm1336_vm1, %v3349_v62, 0.0  ;;  %v1501_v10 = vsub.f32 %v3297_v55, %v1435_v49  ;;  %v1502_v58 = vsub.f32 %v3311_v54, %v1435_v49  ;;  %v1456_v41 = vmax.f32 %v1454_v40, %v1455_v39  ;;  %v1292_v49 = vpop.permute.xlu1 %1291 }
 0x260   :  { %v3361_v13 = vpop.eup %2763  ;;  %v1638_v5 = vrot.slane %v1637_v52, 1  ;;  %v1659_v48 = vsel %vm1336_vm1, %v3355_v16, 0.0  ;;  %v1557_v32 = vmul.f32 1.442695, %v1503_v36  ;;  %v1559_v19 = vmul.f32 1.442695, %v1504_v4 }
 0x261   :  { %v3365_v33 = vpop.eup %2765  ;;  %v1660_v50 = vadd.f32 %v1659_v48, %v1658_v37  ;;  %v1649_v59 = vsel %vm1336_vm1, %v3361_v13, 0.0  ;;  %v1553_v55 = vmul.f32 1.442695, %v1501_v10  ;;  %v1555_v60 = vmul.f32 1.442695, %v1502_v58 }
 0x262   :  { %v2768_v54 = vpop.eup %2767  ;;  %v1650_v17 = vsel %vm1336_vm1, %v3365_v33, 0.0  ;;  %2771 = vpow2.f32 %v1557_v32  ;;  %v1457_v51 = vrot.slane %v1456_v41, 4  ;;  %v3372_v61 = vadd.f32 %v3325_v26, %v1098_v1  ;;  %v1299_v26 = vpop.permute.xlu0 %1298 }
 0x263   :  { %v1661_v0 = vrot.slane %v1660_v50, 4  ;;  %v1651_v7 = vadd.f32 %v1650_v17, %v1649_v59  ;;  %2773 = vpow2.f32 %v1559_v19  ;;  %v1745_v47 = vmul.f32 %v2768_v54, %v3275_v46 }
 0x264   :  { %v2770_v40 = vpop.eup %2769  ;;  %2775 = vpow2.f32 %v1553_v55  ;;  %v1458_v36 = vmax.f32 %v1456_v41, %v1457_v51  ;;  %v1446_v4 = vsel %vm1336_vm1, %v3372_v61, -inf  ;;  %v1746_v39 = vmul.f32 %v2768_v54, %v3279_v42 }
 0x265   :  { %v1662_v37 = vadd.f32 %v1661_v0, %v1660_v50  ;;  %v1652_v10 = vrot.slane %v1651_v7, 4  ;;  %2777 = vpow2.f32 %v1555_v60  ;;  %v1447_v58 = vmax.f32 %v1445_v63, %v1446_v4 }
 0x266   :  { %v1459_v1 = vrot.slane %v1458_v36, 2  ;;  %v1773_v48 = vpack.c.bf16 %v1746_v39, %v1745_v47  ;;  %v1747_v32 = vmul.f32 %v2770_v40, %v3266_v35  ;;  %v1748_v46 = vmul.f32 %v2770_v40, %v3269_v11  ;;  %v1303_v47 = vpop.permute.xlu1 %1302 }
 0x267   :  { %v1663_v19 = vrot.slane %v1662_v37, 2  ;;  %v1653_v59 = vadd.f32 %v1652_v10, %v1651_v7  ;;  %v1448_v55 = vrot.slane %v1447_v58, 4  ;;  %v2584_v41 = vpop.f32.mrf.mxu1  ;;  %v1639_v17 = vadd.f32 %v1638_v5, %v1637_v52 }
 0x268   :  { %v1460_v51 = vmax.f32 %v1458_v36, %v1459_v1  ;;  %2596 = vmatprep.mubr.msk.bf16.mxu0 %vm1336_vm1, %v1773_v48  ;;  %v1774_v42 = vpack.c.bf16 %v1748_v46, %v1747_v32  ;;  %v3381_v50 = vadd.f32 %v2584_v41, %v1299_v26  ;;  %2779 = vrcp.f32 %v1648_v14 }
 0x269   :  { %v1664_v63 = vadd.f32 %v1663_v19, %v1662_v37  ;;  %v1654_v60 = vrot.slane %v1653_v59, 2  ;;  %v1449_v54 = vmax.f32 %v1447_v58, %v1448_v55  ;;  %v1111_v0 = vpop.f32.mrf.mxu1  ;;  %2781 = vrcp.f32 %v1639_v17 }
 0x26a   :  { %v1461_v35 = vrot.slane %v1460_v51, 1  ;;  %2597 = vmatmul.mubr.msk.bf16.gmra.mxu0 %vm1336_vm1, %v1774_v42  ;;  %v3384_v11 = vadd.f32 %v1288_v44, %v1111_v0  ;;  %v1472_v4 = vsel %vm1336_vm1, %v3381_v50, -inf }
 0x26b   :  { %v1665_v7 = vrot.slane %v1664_v63, 1  ;;  %v1655_v52 = vadd.f32 %v1654_v60, %v1653_v59  ;;  %v1450_v5 = vrot.slane %v1449_v54, 2  ;;  %v2585_v40 = vpop.f32.mrf.mxu1 }
 0x26c   :  { %v1462_v36 = vmax.f32 %v1460_v51, %v1461_v35  ;;  %v3388_v14 = vadd.f32 %v2585_v40, %v1303_v47  ;;  %v1463_v10 = vsel %vm1336_vm1, %v3384_v11, -inf }
 0x26d   :  { %v1656_v39 = vrot.slane %v1655_v52, 1  ;;  %v1451_v37 = vmax.f32 %v1449_v54, %v1450_v5  ;;  %v1114_v58 = vpop.f32.mrf.mxu1  ;;  %v1666_v26 = vadd.f32 %v1665_v7, %v1664_v63 }
 0x26e   :  { %v1507_v44 = vsub.f32 %v3335_v34, %v1462_v36  ;;  %v1508_v1 = vsub.f32 %v3342_v9, %v1462_v36  ;;  %v1473_v48 = vsel %vm1336_vm1, %v3388_v14, -inf  ;;  %v3396_v32 = vadd.f32 %v1292_v49, %v1114_v58 }
 0x26f   :  { %v3398_v46 = vpop.eup %2771  ;;  %v1452_v19 = vrot.slane %v1451_v37, 1  ;;  %v1474_v59 = vmax.f32 %v1472_v4, %v1473_v48  ;;  %v1657_v55 = vadd.f32 %v1656_v39, %v1655_v52  ;;  %2783 = vrcp.f32 %v1666_v26 }
 0x270   :  { %v3400_v41 = vpop.eup %2773  ;;  %v1676_v17 = vsel %vm1336_vm1, %v3398_v46, 0.0  ;;  %v1565_v51 = vmul.f32 1.442695, %v1507_v44  ;;  %v1567_v34 = vmul.f32 1.442695, %v1508_v1  ;;  %v1464_v9 = vsel %vm1336_vm1, %v3396_v32, -inf }
 0x271   :  { %v3406_v42 = vpop.eup %2775  ;;  %v1677_v49 = vsel %vm1336_vm1, %v3400_v41, 0.0  ;;  %v1453_v63 = vmax.f32 %v1451_v37, %v1452_v19  ;;  %v1475_v60 = vrot.slane %v1474_v59, 4  ;;  %v1465_v54 = vmax.f32 %v1463_v10, %v1464_v9 }
 0x272   :  { %v3410_v0 = vpop.eup %2777  ;;  %v1678_v47 = vadd.f32 %v1677_v49, %v1676_v17  ;;  %v1667_v35 = vsel %vm1336_vm1, %v3406_v42, 0.0  ;;  %2785 = vpow2.f32 %v1565_v51 }
 0x273   :  { %v1668_v7 = vsel %vm1336_vm1, %v3410_v0, 0.0  ;;  %2787 = vpow2.f32 %v1567_v34  ;;  %v1505_v52 = vsub.f32 %v3340_v43, %v1453_v63  ;;  %v1506_v5 = vsub.f32 %v3372_v61, %v1453_v63 }
 0x274   :  { %v1679_v40 = vrot.slane %v1678_v47, 4  ;;  %v1669_v36 = vadd.f32 %v1668_v7, %v1667_v35  ;;  %v1476_v4 = vmax.f32 %v1474_v59, %v1475_v60  ;;  %v1466_v39 = vrot.slane %v1465_v54, 4 }
 0x275   :  { %v2780_v37 = vpop.eup %2779  ;;  %v1561_v10 = vmul.f32 1.442695, %v1505_v52  ;;  %v1563_v58 = vmul.f32 1.442695, %v1506_v5  ;;  %2789 = vrcp.f32 %v1657_v55 }
 0x276   :  { %v2782_v26 = vpop.eup %2781  ;;  %v1680_v44 = vadd.f32 %v1679_v40, %v1678_v47  ;;  %v1670_v1 = vrot.slane %v1669_v36, 4  ;;  %v1477_v48 = vrot.slane %v1476_v4, 2  ;;  %v1467_v19 = vmax.f32 %v1465_v54, %v1466_v39 }
 0x277   :  { %2791 = vpow2.f32 %v1561_v10  ;;  %v1749_v17 = vmul.f32 %v2782_v26, %v3323_v18  ;;  %v1750_v43 = vmul.f32 %v2782_v26, %v3327_v21  ;;  %v1751_v61 = vmul.f32 %v2780_v37, %v3305_v28 }
 0x278   :  { %v1681_v51 = vrot.slane %v1680_v44, 2  ;;  %v1671_v34 = vadd.f32 %v1670_v1, %v1669_v36  ;;  %2793 = vpow2.f32 %v1563_v58  ;;  %v1478_v59 = vmax.f32 %v1476_v4, %v1477_v48 }
 0x279   :  { %v1468_v9 = vrot.slane %v1467_v19, 2  ;;  %v1775_v49 = vpack.c.bf16 %v1750_v43, %v1749_v17  ;;  %v1752_v55 = vmul.f32 %v2780_v37, %v3313_v20 }
 0x27a   :  { %v1682_v63 = vadd.f32 %v1681_v51, %v1680_v44  ;;  %v1672_v60 = vrot.slane %v1671_v34, 2  ;;  %v1479_v47 = vrot.slane %v1478_v59, 1 }
 0x27b   :  { %v1469_v35 = vmax.f32 %v1467_v19, %v1468_v9  ;;  %2600 = vmatprep.mubr.msk.bf16.mxu0 %vm1336_vm1, %v1775_v49  ;;  %v1776_v54 = vpack.c.bf16 %v1752_v55, %v1751_v61 }
 0x27c   :  { %v2784_v18 = vpop.eup %2783  ;;  %v1683_v7 = vrot.slane %v1682_v63, 1  ;;  %v1673_v21 = vadd.f32 %v1672_v60, %v1671_v34  ;;  %v1480_v52 = vmax.f32 %v1478_v59, %v1479_v47 }
 0x27d   :  { %v1470_v28 = vrot.slane %v1469_v35, 1  ;;  %2601 = vmatmul.mubr.msk.bf16.gmra.mxu0 %vm1336_vm1, %v1776_v54  ;;  %v1755_v17 = vmul.f32 %v2784_v18, %v3349_v62  ;;  %v1756_v43 = vmul.f32 %v2784_v18, %v3355_v16 }
 0x27e   :  { %v1674_v5 = vrot.slane %v1673_v21, 1  ;;  %v1511_v40 = vsub.f32 %v3381_v50, %v1480_v52  ;;  %v1512_v36 = vsub.f32 %v3388_v14, %v1480_v52  ;;  %v1684_v20 = vadd.f32 %v1683_v7, %v1682_v63 }
 0x27f   :  { %v3426_v4 = vpop.eup %2785  ;;  %v1471_v39 = vmax.f32 %v1469_v35, %v1470_v28  ;;  %v1778_v60 = vpack.c.bf16 %v1756_v43, %v1755_v17 }
 0x280   :  { %v3428_v37 = vpop.eup %2787  ;;  %v1694_v10 = vsel %vm1336_vm1, %v3426_v4, 0.0  ;;  %v1573_v58 = vmul.f32 1.442695, %v1511_v40  ;;  %v1575_v26 = vmul.f32 1.442695, %v1512_v36  ;;  %v1675_v44 = vadd.f32 %v1674_v5, %v1673_v21 }
 0x281   :  { %v1695_v1 = vsel %vm1336_vm1, %v3428_v37, 0.0  ;;  %v1509_v48 = vsub.f32 %v3384_v11, %v1471_v39  ;;  %v1510_v50 = vsub.f32 %v3396_v32, %v1471_v39  ;;  %2795 = vrcp.f32 %v1684_v20 }
 0x282   :  { %v2790_v14 = vpop.eup %2789  ;;  %v1696_v19 = vadd.f32 %v1695_v1, %v1694_v10  ;;  %2797 = vpow2.f32 %v1573_v58 }
 0x283   :  { %2799 = vpow2.f32 %v1575_v26  ;;  %v1569_v61 = vmul.f32 1.442695, %v1509_v48  ;;  %v1571_v51 = vmul.f32 1.442695, %v1510_v50  ;;  %v1753_v34 = vmul.f32 %v2790_v14, %v3361_v13 }
 0x284   :  { %v3439_v59 = vpop.eup %2791  ;;  %v1697_v9 = vrot.slane %v1696_v19, 4  ;;  %v1754_v11 = vmul.f32 %v2790_v14, %v3365_v33  ;;  %2801 = vrcp.f32 %v1675_v44 }
 0x285   :  { %v2794_v32 = vpop.eup %2793  ;;  %v1685_v49 = vsel %vm1336_vm1, %v3439_v59, 0.0  ;;  %2803 = vpow2.f32 %v1569_v61 }
 0x286   :  { %v1698_v55 = vadd.f32 %v1697_v9, %v1696_v19  ;;  %v1686_v62 = vsel %vm1336_vm1, %v2794_v32, 0.0  ;;  %2805 = vpow2.f32 %v1571_v51  ;;  %v1777_v16 = vpack.c.bf16 %v1754_v11, %v1753_v34 }
 0x287   :  { %v1687_v63 = vadd.f32 %v1686_v62, %v1685_v49 }
 0x288   :  { %v1699_v47 = vrot.slane %v1698_v55, 2  ;;  %2604 = vmatprep.mubr.msk.bf16.mxu0 %vm1336_vm1, %v1777_v16 }
 0x289   :  { %v1688_v13 = vrot.slane %v1687_v63, 4  ;;  %2605 = vmatmul.mubr.msk.bf16.gmra.mxu0 %vm1336_vm1, %v1778_v60 }
 0x28a   :  { %v1700_v33 = vadd.f32 %v1699_v47, %v1698_v55 }
 0x28b   :  { %v1689_v35 = vadd.f32 %v1688_v13, %v1687_v63 }
 0x28c   :  { %v1701_v54 = vrot.slane %v1700_v33, 1 }
 0x28d   :  { %v1690_v18 = vrot.slane %v1689_v35, 2 }
 0x28e   :  { %v2796_v7 = vpop.eup %2795  ;;  %v1702_v21 = vadd.f32 %v1701_v54, %v1700_v33 }
 0x28f   :  { %v2798_v52 = vpop.eup %2797  ;;  %v1691_v28 = vadd.f32 %v1690_v18, %v1689_v35  ;;  %v1759_v10 = vmul.f32 %v2796_v7, %v3398_v46  ;;  %v1760_v58 = vmul.f32 %v2796_v7, %v3400_v41 }
 0x290   :  { %v2800_v5 = vpop.eup %2799  ;;  %v1712_v40 = vsel %vm1336_vm1, %v2798_v52, 0.0  ;;  %2807 = vrcp.f32 %v1702_v21 }
 0x291   :  { %v2802_v36 = vpop.eup %2801  ;;  %v1692_v20 = vrot.slane %v1691_v28, 1  ;;  %v1713_v39 = vsel %vm1336_vm1, %v2800_v5, 0.0  ;;  %v1780_v34 = vpack.c.bf16 %v1760_v58, %v1759_v10  ;;  %v2715_v58 = vld [vmem:[%s3550_s6 + $0x18] sm:$0xff]  }
 0x292   :  { %v2804_v26 = vpop.eup %2803  ;;  %v1714_v44 = vadd.f32 %v1713_v39, %v1712_v40  ;;  %v1757_v1 = vmul.f32 %v2802_v36, %v3406_v42  ;;  %v1758_v48 = vmul.f32 %v2802_v36, %v3410_v0 }
 0x293   :  { %v2806_v50 = vpop.eup %2805  ;;  %v1703_v14 = vsel %vm1336_vm1, %v2804_v26, 0.0  ;;  %v1693_v19 = vadd.f32 %v1692_v20, %v1691_v28 }
 0x294   :  { %v1715_v17 = vrot.slane %v1714_v44, 4  ;;  %v1704_v43 = vsel %vm1336_vm1, %v2806_v50, 0.0  ;;  %v1779_v61 = vpack.c.bf16 %v1758_v48, %v1757_v1  ;;  %v2717_v1 = vld [vmem:[%s3550_s6 + $0x8] sm:$0xff]  }
 0x295   :  { %v1705_v51 = vadd.f32 %v1704_v43, %v1703_v14  ;;  %2809 = vrcp.f32 %v1693_v19 }
 0x296   :  { %v1716_v46 = vadd.f32 %v1715_v17, %v1714_v44  ;;  %2608 = vmatprep.mubr.msk.bf16.mxu0 %vm1336_vm1, %v1779_v61 }
 0x297   :  { %v1706_v41 = vrot.slane %v1705_v51, 4  ;;  %2609 = vmatmul.mubr.msk.bf16.gmra.mxu0 %vm1336_vm1, %v1780_v34 }
 0x298   :  { %v1717_v42 = vrot.slane %v1716_v46, 2 }
 0x299   :  { %v1707_v0 = vadd.f32 %v1706_v41, %v1705_v51 }
 0x29a   :  { %v1718_v9 = vadd.f32 %v1717_v42, %v1716_v46 }
 0x29b   :  { %v1708_v11 = vrot.slane %v1707_v0, 2 }
 0x29c   :  { %v1719_v49 = vrot.slane %v1718_v9, 1 }
 0x29d   :  { %v1709_v55 = vadd.f32 %v1708_v11, %v1707_v0  ;;  %v2808_v16 = vpop.eup %2807 }
 0x29e   :  { %v1720_v62 = vadd.f32 %v1719_v49, %v1718_v9  ;;  %v1763_v13 = vmul.f32 %v2808_v16, %v3426_v4  ;;  %v1764_v33 = vmul.f32 %v2808_v16, %v3428_v37  ;;  %v2711_v37 = vld [vmem:[%s3550_s6 + $0x38] sm:$0xff]  }
 0x29f   :  { %v1710_v63 = vrot.slane %v1709_v55, 1 }
 0x2a0   :  { %2811 = vrcp.f32 %v1720_v62  ;;  %v1782_v7 = vpack.c.bf16 %v1764_v33, %v1763_v13 }
 0x2a1   :  { %v1711_v60 = vadd.f32 %v1710_v63, %v1709_v55 }
 0x2a2   :  { %v2810_v47 = vpop.eup %2809 }
 0x2a3   :  { %v1761_v35 = vmul.f32 %v2810_v47, %v3439_v59  ;;  %v1762_v54 = vmul.f32 %v2810_v47, %v2794_v32  ;;  %2813 = vrcp.f32 %v1711_v60  ;;  %v2934_v59 = vmov 0.0   ;;  %v2712_v32 = vld [vmem:[%s3550_s6 + $0x30] sm:$0xff]  }
 0x2a4   :  { %2620 = vmatprep.subr.bf16.mxu1 %v2934_v59  ;;  %2636 = vmatprep.mubr.msk.bf16.mxu1 %vm2935_vm2, %v2934_v59 }
 0x2a5   :  { %v1781_v18 = vpack.c.bf16 %v1762_v54, %v1761_v35  ;;  %2621 = vmatpush3.bf16.msra.mxu1 %v2711_v37 }
 0x2a6   :  { %2622 = vmatprep.subr.bf16.mxu1 %v2934_v59 }
 0x2a7   :  { %2612 = vmatprep.mubr.msk.bf16.mxu0 %vm1336_vm1, %v1781_v18 }
 0x2a8   :  { %2613 = vmatmul.mubr.msk.bf16.gmra.mxu0 %vm1336_vm1, %v1782_v7 }
 0x2a9   :  { %2623 = vmatpush3.bf16.msra.mxu1 %v2712_v32 }
 0x2aa   :  { %2624 = vmatprep.subr.bf16.mxu1 %v2934_v59 }
 0x2ad   :  { %v2812_v21 = vpop.eup %2811 }
 0x2ae   :  { %v1767_v40 = vmul.f32 %v2812_v21, %v2798_v52  ;;  %v1768_v36 = vmul.f32 %v2812_v21, %v2800_v5  ;;  %v2713_v52 = vld [vmem:[%s3550_s6 + $0x28] sm:$0xff]   ;;  %v2714_v5 = vld [vmem:[%s3550_s6 + $0x20] sm:$0xff]  }
 0x2af   :  { %2625 = vmatpush3.bf16.msra.mxu1 %v2713_v52 }
 0x2b0   :  { %v2814_v28 = vpop.eup %2813  ;;  %v1784_v4 = vpack.c.bf16 %v1768_v36, %v1767_v40  ;;  %2626 = vmatprep.subr.bf16.mxu1 %v2934_v59 }
 0x2b1   :  { %v1765_v20 = vmul.f32 %v2814_v28, %v2804_v26  ;;  %v1766_v39 = vmul.f32 %v2814_v28, %v2806_v50  ;;  %v2716_v26 = vld [vmem:[%s3550_s6 + $0x10] sm:$0xff]   ;;  %v2718_v50 = vld [vmem:[%s3550_s6] sm:$0xff]   ;;  %s2936_s6 = smov [#allocation10]  }
 0x2b2   :  { %s2330_s30 = sshll.u32 %s2936_s6, 4  ;;  %s2331_s30 = int_to_ptr.vmem [resolvable:$true] %s2330_s30 }
 0x2b3   :  { %v1783_v10 = vpack.c.bf16 %v1766_v39, %v1765_v20  ;;  %2627 = vmatpush3.bf16.msra.mxu1 %v2714_v5  ;;  %s2895_s8 = scalar_lea.vmem %s2331_s30, 256  ;;  %p2900_p7 = scmp.lt.s32.totalorder %s2331_s30, %s2331_s30 }
 0x2b4   :  { %2628 = vmatprep.subr.bf16.mxu1 %v2934_v59  ;;  %p2896_p6 = scmp.ne.s32.totalorder %s2331_s30, %s2895_s8  ;;  %p2901_p8 = scmp.lt.s32.totalorder %s2895_s8, %s2895_s8 }
 0x2b5   :  { %2616 = vmatprep.mubr.msk.bf16.mxu0 %vm1336_vm1, %v1783_v10 }
 0x2b6   :  { %2617 = vmatmul.mubr.msk.bf16.gmra.mxu0 %vm1336_vm1, %v1784_v4  ;;  %p2902_p9 = por %p2901_p8, %p2900_p7 }
 0x2b7   :  { %2629 = vmatpush3.bf16.msra.mxu1 %v2715_v58 }
 0x2b8   :  { %2630 = vmatprep.subr.bf16.mxu1 %v2934_v59  ;;  %p2903_p10 = pnand %p2902_p9, %p2896_p6 }
 0x2bb   :  { %2631 = vmatpush3.bf16.msra.mxu1 %v2716_v26 }
 0x2bc   :  { %2632 = vmatprep.subr.bf16.mxu1 %v2934_v59 }
 0x2bf   :  { %2633 = vmatpush3.bf16.msra.mxu1 %v2717_v1 }
 0x2c0   :  { %2634 = vmatprep.subr.bf16.mxu1 %v2934_v59 }
 0x2c3   :  { %2635 = vmatpush3.bf16.msra.mxu1 %v2718_v50 }
 0x30a   :  { %v2590_v44 = vpop.f32.mrf.mxu0 }
 0x30b   :  { %v2001_v60 = vmul.f32 %v2590_v44, %v3087_v57 }
 0x30c   :  { %v1872_v48 = vpop.f32.mrf.mxu0 }
 0x30d   :  { %v1999_v47 = vmul.f32 %v1872_v48, %v3089_v3 }
 0x30e   :  { %v2591_v14 = vpop.f32.mrf.mxu0 }
 0x30f   :  { %v2002_v16 = vmul.f32 %v2591_v14, %v3098_v12 }
 0x310   :  { %v1875_v19 = vpop.f32.mrf.mxu0 }
 0x311   :  { %v2000_v63 = vmul.f32 %v1875_v19, %v3100_v22  ;;  %v2038_v33 = vadd.f32 %v2002_v16, %v2001_v60 }
 0x313   :  { %v2031_v35 = vadd.f32 %v2000_v63, %v1999_v47  ;;  %v2039_v18 = vrot.slane %v2038_v33, 4 }
 0x315   :  { %v2032_v7 = vrot.slane %v2031_v35, 4  ;;  %v2040_v40 = vadd.f32 %v2039_v18, %v2038_v33 }
 0x317   :  { %v2033_v36 = vadd.f32 %v2032_v7, %v2031_v35  ;;  %v2041_v10 = vrot.slane %v2040_v40, 2 }
 0x319   :  { %v2034_v22 = vrot.slane %v2033_v36, 2  ;;  %v2042_v58 = vadd.f32 %v2041_v10, %v2040_v40 }
 0x31b   :  { %v2035_v26 = vadd.f32 %v2034_v22, %v2033_v36  ;;  %v2043_v14 = vrot.slane %v2042_v58, 1  ;;  %v3572_v36 = vld [vmem:[#allocation16_spill] sm:$0xff] }
 0x31d   :  { %v2044_v47 = vadd.f32 %v2043_v14, %v2042_v58 }
 0x31f   :  { %v2594_v17 = vpop.f32.mrf.mxu0 }
 0x320   :  { %v2005_v44 = vmul.f32 %v2594_v17, %v3102_v29  ;;  %v3566_v29 = vld [vmem:[#allocation19_spill] sm:$0xff] }
 0x321   :  { %v1888_v43 = vpop.f32.mrf.mxu0 }
 0x322   :  { %v2003_v57 = vmul.f32 %v1888_v43, %v3104_v38 }
 0x323   :  { %v2595_v61 = vpop.f32.mrf.mxu0 }
 0x324   :  { %v2006_v37 = vmul.f32 %v2595_v61, %v3106_v45 }
 0x325   :  { %v1891_v51 = vpop.f32.mrf.mxu0 }
 0x326   :  { %v2004_v39 = vmul.f32 %v1891_v51, %v3108_v53  ;;  %v2052_v45 = vadd.f32 %v2006_v37, %v2005_v44 }
 0x328   :  { %v2045_v59 = vadd.f32 %v2004_v39, %v2003_v57  ;;  %v3573_v57 = vld [vmem:[#allocation21_spill] sm:$0xff] }
 0x32a   :  { %v2598_v34 = vpop.f32.mrf.mxu0  ;;  %v2046_v48 = vrot.slane %v2045_v59, 4 }
 0x32c   :  { %v1904_v46 = vpop.f32.mrf.mxu0  ;;  %v2047_v51 = vadd.f32 %v2046_v48, %v2045_v59 }
 0x32d   :  { %v2007_v38 = vmul.f32 %v1904_v46, %v3112_v6  ;;  %v3567_v46 = vld [vmem:[#allocation17_spill] sm:$0xff] }
 0x32e   :  { %v2599_v41 = vpop.f32.mrf.mxu0  ;;  %v2048_v7 = vrot.slane %v2047_v51, 2 }
 0x32f   :  { %v2010_v19 = vmul.f32 %v2599_v41, %v3114_v56  ;;  %v3569_v56 = vld [vmem:[#allocation18_spill] sm:$0xff] }
 0x330   :  { %v1907_v42 = vpop.f32.mrf.mxu0  ;;  %v2049_v44 = vadd.f32 %v2048_v7, %v2047_v51 }
 0x331   :  { %v2008_v32 = vmul.f32 %v1907_v42, %v3116_v15 }
 0x333   :  { %v2059_v50 = vadd.f32 %v2008_v32, %v2007_v38 }
 0x335   :  { %v2060_v16 = vrot.slane %v2059_v50, 4 }
 0x337   :  { %v2061_v40 = vadd.f32 %v2060_v16, %v2059_v50 }
 0x33d   :  { %v3488_v0 = vpop.f32.mrf.mxu0 }
 0x33f   :  { %v1920_v9 = vpop.f32.mrf.mxu0 }
 0x340   :  { %v2011_v42 = vmul.f32 %v1920_v9, %v3567_v46 }
 0x341   :  { %v3490_v11 = vpop.f32.mrf.mxu0 }
 0x342   :  { %v2014_v41 = vmul.f32 %v3490_v11, %v3569_v56 }
 0x343   :  { %v1923_v49 = vpop.f32.mrf.mxu0 }
 0x349   :  { %v2606_v55 = vpop.f32.mrf.mxu0 }
 0x34b   :  { %v1936_v62 = vpop.f32.mrf.mxu0 }
 0x34c   :  { %v2015_v52 = vmul.f32 %v1936_v62, %v3128_v25 }
 0x34d   :  { %v2607_v13 = vpop.f32.mrf.mxu0 }
 0x34e   :  { %v2018_v5 = vmul.f32 %v2607_v13, %v3132_v27  ;;  %v2036_v27 = vrot.slane %v2035_v26, 1 }
 0x34f   :  { %v1939_v54 = vpop.f32.mrf.mxu0 }
 0x350   :  { %v2016_v3 = vmul.f32 %v1939_v54, %v3134_v2  ;;  %v2017_v2 = vmul.f32 %v2606_v55, %v3126_v24  ;;  %v2053_v24 = vrot.slane %v2052_v45, 4  ;;  %v3568_v55 = vld [vmem:[#allocation15_spill] sm:$0xff]  ;;  %v2037_v13 = vadd.f32 %v2036_v27, %v2035_v26 }
 0x351   :  { %v2009_v62 = vmul.f32 %v2598_v34, %v3568_v55 }
 0x352   :  { %v2094_v15 = vadd.f32 %v2018_v5, %v2017_v2  ;;  %v2054_v18 = vadd.f32 %v2053_v24, %v2052_v45 }
 0x354   :  { %v2095_v63 = vrot.slane %v2094_v15, 4  ;;  %v2055_v58 = vrot.slane %v2054_v18, 2 }
 0x356   :  { %v2096_v39 = vadd.f32 %v2095_v63, %v2094_v15 }
 0x357   :  { %v2610_v21 = vpop.f32.mrf.mxu0 }
 0x358   :  { %v2021_v17 = vmul.f32 %v2610_v21, %v3566_v29  ;;  %v3570_v21 = vld [vmem:[#allocation20_spill] sm:$0xff]  ;;  %v2097_v38 = vrot.slane %v2096_v39, 2 }
 0x359   :  { %v1952_v28 = vpop.f32.mrf.mxu0 }
 0x35a   :  { %v2019_v53 = vmul.f32 %v1952_v28, %v3138_v30  ;;  %v2012_v30 = vmul.f32 %v1923_v49, %v3124_v23  ;;  %v2066_v49 = vadd.f32 %v2010_v19, %v2009_v62  ;;  %v3571_v28 = vld [vmem:[#allocation22_spill] sm:$0xff]  ;;  %v2098_v29 = vadd.f32 %v2097_v38, %v2096_v39 }
 0x35b   :  { %v2611_v20 = vpop.f32.mrf.mxu0 }
 0x35c   :  { %v2022_v25 = vmul.f32 %v2611_v20, %v3140_v8  ;;  %v2073_v23 = vadd.f32 %v2012_v30, %v2011_v42  ;;  %v2013_v20 = vmul.f32 %v3488_v0, %v3572_v36  ;;  %v2067_v59 = vrot.slane %v2066_v49, 4 }
 0x35d   :  { %v1955_v12 = vpop.f32.mrf.mxu0  ;;  %v2056_v30 = vadd.f32 %v2055_v58, %v2054_v18  ;;  %v3575_v18 = vld [vmem:[#allocation24_spill] sm:$0xff] }
 0x35e   :  { %v2020_v4 = vmul.f32 %v1955_v12, %v3142_v31  ;;  %v2087_v31 = vadd.f32 %v2016_v3, %v2015_v52  ;;  %v2108_v8 = vadd.f32 %v2022_v25, %v2021_v17  ;;  %v2074_v22 = vrot.slane %v2073_v23, 4 }
 0x35f   :  { %v2080_v32 = vadd.f32 %v2014_v41, %v2013_v20  ;;  %v2068_v50 = vadd.f32 %v2067_v59, %v2066_v49  ;;  %v2099_v49 = vrot.slane %v2098_v29, 1 }
 0x360   :  { %v2101_v1 = vadd.f32 %v2020_v4, %v2019_v53  ;;  %v2088_v43 = vrot.slane %v2087_v31, 4  ;;  %v2109_v12 = vrot.slane %v2108_v8, 4  ;;  %v3574_v4 = vld [vmem:[#allocation23_spill] sm:$0xff]  ;;  %v2143_v53 = vpack.c.bf16 %v2037_v13, %v2037_v13 }
 0x361   :  { %v2075_v45 = vadd.f32 %v2074_v22, %v2073_v23  ;;  %v2081_v15 = vrot.slane %v2080_v32, 4  ;;  %v2069_v55 = vrot.slane %v2068_v50, 2 }
 0x362   :  { %v2102_v6 = vrot.slane %v2101_v1, 4  ;;  %v2089_v33 = vadd.f32 %v2088_v43, %v2087_v31  ;;  %v2110_v2 = vadd.f32 %v2109_v12, %v2108_v8  ;;  %v2144_v31 = vpack.c.bf16 %v2044_v47, %v2044_v47  ;;  %v3577_v12 = vld [vmem:[#allocation25_spill] sm:$0xff] }
 0x363   :  { %v2191_v27 = vunpack.c.l.b16 %v2143_v53  ;;  %v2050_v43 = vrot.slane %v2049_v44, 1  ;;  %v2076_v46 = vrot.slane %v2075_v45, 2  ;;  %v2082_v62 = vadd.f32 %v2081_v15, %v2080_v32 }
 0x364   :  { %v2103_v35 = vadd.f32 %v2102_v6, %v2101_v1  ;;  %v2090_v52 = vrot.slane %v2089_v33, 2  ;;  %v2062_v1 = vrot.slane %v2061_v40, 2  ;;  %v2111_v17 = vrot.slane %v2110_v2, 2 }
 0x365   :  { %v2192_v24 = vunpack.c.l.b16 %v2144_v31  ;;  %v2057_v47 = vrot.slane %v2056_v30, 1  ;;  %v2051_v23 = vadd.f32 %v2050_v43, %v2049_v44 }
 0x366   :  { %v2104_v5 = vrot.slane %v2103_v35, 2  ;;  %v2091_v25 = vadd.f32 %v2090_v52, %v2089_v33  ;;  %v2063_v51 = vadd.f32 %v2062_v1, %v2061_v40  ;;  %v2112_v56 = vadd.f32 %v2111_v17, %v2110_v2 }
 0x367   :  { %v2058_v58 = vadd.f32 %v2057_v47, %v2056_v30 }
 0x368   :  { %v2614_v61 = vpop.f32.mrf.mxu0  ;;  %v2105_v14 = vadd.f32 %v2104_v5, %v2103_v35  ;;  %v2092_v16 = vrot.slane %v2091_v25, 1  ;;  %v2064_v35 = vrot.slane %v2063_v51, 1 }
 0x369   :  { %v2025_v9 = vmul.f32 %v2614_v61, %v3570_v21  ;;  %v3576_v21 = vld [vmem:[#allocation26_spill] sm:$0xff]  ;;  %v2146_v43 = vpack.c.bf16 %v2058_v58, %v2058_v58 }
 0x36a   :  { %v1968_v60 = vpop.f32.mrf.mxu0  ;;  %v2106_v63 = vrot.slane %v2105_v14, 1  ;;  %v2093_v40 = vadd.f32 %v2092_v16, %v2091_v25  ;;  %v2065_v32 = vadd.f32 %v2064_v35, %v2063_v51 }
 0x36b   :  { %v2023_v3 = vmul.f32 %v1968_v60, %v3573_v57  ;;  %v2208_v60 = vsel %vm2207_vm3, %v2192_v24, %v2191_v27  ;;  %v3578_v57 = vld [vmem:[#allocation27_spill] sm:$0xff] }
 0x36c   :  { %v2615_v54 = vpop.f32.mrf.mxu0  ;;  %v2107_v36 = vadd.f32 %v2106_v63, %v2105_v14  ;;  %v2151_v38 = vpack.c.bf16 %v2093_v40, %v2093_v40  ;;  %v2147_v25 = vpack.c.bf16 %v2065_v32, %v2065_v32 }
 0x36d   :  { %v2026_v34 = vmul.f32 %v2615_v54, %v3571_v28  ;;  %v2077_v54 = vadd.f32 %v2076_v46, %v2075_v45  ;;  %v2070_v28 = vadd.f32 %v2069_v55, %v2068_v50 }
 0x36e   :  { %v1971_v10 = vpop.f32.mrf.mxu0  ;;  %v2153_v2 = vpack.c.bf16 %v2107_v36, %v2107_v36  ;;  %v2199_v30 = vunpack.c.l.b16 %v2151_v38  ;;  %v2195_v16 = vunpack.c.l.b16 %v2147_v25  ;;  %v2320_v38 = vld [vmem:[#allocation2 + $0x8] sm:$0xff] }
 0x36f   :  { %v2122_v11 = vadd.f32 %v2026_v34, %v2025_v9  ;;  %v2024_v37 = vmul.f32 %v1971_v10, %v3574_v4  ;;  %v2083_v34 = vrot.slane %v2082_v62, 2  ;;  %v2100_v4 = vadd.f32 %v2099_v49, %v2098_v29 }
 0x370   :  { %v2078_v52 = vrot.slane %v2077_v54, 1 }
 0x371   :  { %v2115_v26 = vadd.f32 %v2024_v37, %v2023_v3  ;;  %v2123_v0 = vrot.slane %v2122_v11, 4  ;;  %v2113_v37 = vrot.slane %v2112_v56, 1  ;;  %v2084_v44 = vadd.f32 %v2083_v34, %v2082_v62 }
 0x372   :  { %v2079_v14 = vadd.f32 %v2078_v52, %v2077_v54 }
 0x373   :  { %v2116_v48 = vrot.slane %v2115_v26, 4  ;;  %v2124_v6 = vadd.f32 %v2123_v0, %v2122_v11  ;;  %v2145_v11 = vpack.c.bf16 %v2051_v23, %v2051_v23  ;;  %v2114_v50 = vadd.f32 %v2113_v37, %v2112_v56 }
 0x374   :  { %v2085_v17 = vrot.slane %v2084_v44, 1  ;;  %v2149_v63 = vpack.c.bf16 %v2079_v14, %v2079_v14 }
 0x375   :  { %v2117_v19 = vadd.f32 %v2116_v48, %v2115_v26  ;;  %v2125_v41 = vrot.slane %v2124_v6, 2  ;;  %v2071_v26 = vrot.slane %v2070_v28, 1  ;;  %v2193_v45 = vunpack.c.l.b16 %v2145_v11 }
 0x376   :  { %v2618_v61 = vpop.f32.mrf.mxu0  ;;  %v2152_v48 = vpack.c.bf16 %v2100_v4, %v2100_v4  ;;  %v2154_v55 = vpack.c.bf16 %v2114_v50, %v2114_v50  ;;  %v2086_v49 = vadd.f32 %v2085_v17, %v2084_v44 }
 0x377   :  { %v2118_v42 = vrot.slane %v2117_v19, 2  ;;  %v2029_v7 = vmul.f32 %v2618_v61, %v3575_v18  ;;  %v2126_v59 = vadd.f32 %v2125_v41, %v2124_v6  ;;  %v2072_v29 = vadd.f32 %v2071_v26, %v2070_v28 }
 0x378   :  { %v1984_v8 = vpop.f32.mrf.mxu0  ;;  %v2201_v6 = vunpack.c.l.b16 %v2153_v2  ;;  %v2210_v46 = vsel %vm2209_vm4, %v2193_v45, %v2208_v60  ;;  %v2202_v60 = vunpack.c.l.b16 %v2154_v55  ;;  %v2150_v40 = vpack.c.bf16 %v2086_v49, %v2086_v49 }
 0x379   :  { %v2119_v13 = vadd.f32 %v2118_v42, %v2117_v19  ;;  %v2027_v10 = vmul.f32 %v1984_v8, %v3577_v12  ;;  %v2127_v15 = vrot.slane %v2126_v59, 1  ;;  %v2200_v42 = vunpack.c.l.b16 %v2152_v48 }
 0x37a   :  { %v2619_v33 = vpop.f32.mrf.mxu0  ;;  %v2148_v23 = vpack.c.bf16 %v2072_v29, %v2072_v29  ;;  %v2198_v11 = vunpack.c.l.b16 %v2150_v40 }
 0x37b   :  { %v2030_v9 = vmul.f32 %v2619_v33, %v3576_v21  ;;  %v2120_v39 = vrot.slane %v2119_v13, 1  ;;  %v2128_v62 = vadd.f32 %v2127_v15, %v2126_v59  ;;  %v2221_v56 = vsel %vm2207_vm3, %v2200_v42, %v2199_v30 }
 0x37c   :  { %v1987_v20 = vpop.f32.mrf.mxu0  ;;  %v2222_v41 = vsel %vm2209_vm4, %v2201_v6, %v2221_v56  ;;  %v2196_v34 = vunpack.c.l.b16 %v2148_v23 }
 0x37d   :  { %v2136_v22 = vadd.f32 %v2030_v9, %v2029_v7  ;;  %v2028_v3 = vmul.f32 %v1987_v20, %v3578_v57  ;;  %v2121_v0 = vadd.f32 %v2120_v39, %v2119_v13  ;;  %v2194_v13 = vunpack.c.l.b16 %v2146_v43 }
 0x37e   :  { %v2156_v7 = vpack.c.bf16 %v2128_v62, %v2128_v62  ;;  %v2197_v9 = vunpack.c.l.b16 %v2149_v63  ;;  %v2223_v36 = vsel %vm2211_vm5, %v2202_v60, %v2222_v41 }
 0x37f   :  { %v2137_v5 = vrot.slane %v2136_v22, 4  ;;  %v2129_v53 = vadd.f32 %v2028_v3, %v2027_v10  ;;  %v2155_v61 = vpack.c.bf16 %v2121_v0, %v2121_v0  ;;  %v2212_v18 = vsel %vm2211_vm5, %v2194_v13, %v2210_v46 }
 0x380   :  { %v2214_v21 = vsel %vm2213_vm6, %v2195_v16, %v2212_v18 }
 0x381   :  { %v2138_v31 = vadd.f32 %v2137_v5, %v2136_v22  ;;  %v2130_v1 = vrot.slane %v2129_v53, 4  ;;  %v2203_v33 = vunpack.c.l.b16 %v2155_v61  ;;  %v2216_v10 = vsel %vm2215_vm7, %v2196_v34, %v2214_v21 }
 0x382   :  { %v2204_v22 = vunpack.c.l.b16 %v2156_v7  ;;  %v2218_v57 = vsel %vm2217_vm8, %v2197_v9, %v2216_v10 }
 0x383   :  { %v2139_v27 = vrot.slane %v2138_v31, 2  ;;  %v2131_v19 = vadd.f32 %v2130_v1, %v2129_v53  ;;  %v2224_v39 = vsel %vm2213_vm6, %v2203_v33, %v2223_v36  ;;  %v2220_v32 = vsel %vm2219_vm9, %v2198_v11, %v2218_v57  ;;  %v2319_v53 = vld [vmem:[#allocation2] sm:$0xff] }
 0x384   :  { %v2225_v37 = vsel %vm2215_vm7, %v2204_v22, %v2224_v39 }
 0x385   :  { %v2140_v24 = vadd.f32 %v2139_v27, %v2138_v31  ;;  %v2132_v51 = vrot.slane %v2131_v19, 2 }
 0x387   :  { %v2141_v8 = vrot.slane %v2140_v24, 1  ;;  %v2133_v47 = vadd.f32 %v2132_v51, %v2131_v19 }
 0x389   :  { %v2142_v35 = vadd.f32 %v2141_v8, %v2140_v24  ;;  %v2134_v54 = vrot.slane %v2133_v47, 1 }
 0x38b   :  { %v2135_v28 = vadd.f32 %v2134_v54, %v2133_v47  ;;  %v2158_v20 = vpack.c.bf16 %v2142_v35, %v2142_v35 }
 0x38d   :  { %v2157_v12 = vpack.c.bf16 %v2135_v28, %v2135_v28  ;;  %v2206_v4 = vunpack.c.l.b16 %v2158_v20 }
 0x38f   :  { %v2205_v3 = vunpack.c.l.b16 %v2157_v12 }
 0x391   :  { %v2226_v59 = vsel %vm2217_vm8, %v2205_v3, %v2225_v37 }
 0x392   :  { %v2227_v52 = vsel %vm2219_vm9, %v2206_v4, %v2226_v59 }
 0x393   :  { %v2228_v5 = vpack.c.b16 %v2227_v52, %v2220_v32 }
 0x395   :  { %2637 = vmatmul.mubr.bf16.vlgmr.msra.gmra.mxu1 %v2228_v5 }
 0x455   :  { %v2312_v58 = vpop.f32.mrf.mxu1 }
 0x456   :  { %v2321_v26 = vadd.f32 %v2319_v53, %v2312_v58 }
 0x457   :  { %v2638_v44 = vpop.f32.mrf.mxu1 }
 0x458   :  { %2323 = vst [vmem:[#allocation10] sm:$0xff] %v2321_v26 }
 0x459   :  { %v2315_v2 = vpop.f32.mrf.mxu1 }
 0x45a   :  { %v2322_v0 = vadd.f32 %v2320_v38, %v2315_v2 }
 0x45b   :  { %v2639_v31 = vpop.f32.mrf.mxu1 }
 0x45c   :  { %2324 = vst [vmem:[#allocation10 + $0x8] sm:$0xff] %v2322_v0 }
 0x45d   :  { %2906 = shalt.err (!%p2903_p10)
}
 0x45e   :  { %2336 = dma.vmem_to_hbm [thread:$0]  %s2331_s30, 256, %s3551_s7, [#allocation4], %s2927_s11, %s2927_s11, %s2928_s12  }
 0x45f   :  { %2921 = dma.done.wait [#allocation4], 256  }
 0x460   :  { %2922 = vsyncadd [#allocation4], 4294967040 }
 0x461   :  { %2340 = vsyncpa [#allocation3], 1 }
 0x462   :  { %2341 = vsyncpa [#allocation6], 1 }
 0x463   :  { %2342 = vsyncpa [#allocation9], 1 }
 0x464   :  { %2343 = vsyncpa [#allocation4], 1 }

</bundles_post_ra>
